<compile_context>
chip_gen: v7x
topology: tpu7x:2x2x1
jax: 0.10.0
libtpu: 0.0.40
codegen_flags: <defaults>
</compile_context>

<pallas_src>
import functools
import math

import jax
import jax.numpy as jnp
from jax.experimental import pallas as pl
from jax.experimental.pallas import tpu as pltpu


# ----------------------------------------------------------------------------
# VMEM budgeting (128 MiB on v5e/v6e, 64 MiB on v7x).
# ----------------------------------------------------------------------------
def _vmem_capacity_bytes():
    try:
        info = pltpu.get_tpu_info()
        cap = int(getattr(info, "vmem_capacity_bytes", 0) or 0)
        if cap > 0:
            return cap
    except Exception:
        pass
    return 64 * 1024 * 1024  # conservative fallback (v7x-sized)


def _vmem_limit_bytes():
    cap = _vmem_capacity_bytes()
    # Leave headroom for compiler-internal scratch.
    return max(min(cap - (16 << 20), 112 << 20), 32 << 20)


# ----------------------------------------------------------------------------
# LSTM recurrence kernel.
#   gx_ref : (tt, bb, 4H) bf16  precomputed x @ W_ih^T + (b_ih+b_hh)
#   whh_ref: (H, 4H)      bf16  lane-concatenated W_hh^T (gate order i,f,g,o)
#   Grid: (batch blocks [parallel], time blocks [arbitrary, serial]).
#   h/c persist in VMEM scratch across time blocks; carried as values inside.
# ----------------------------------------------------------------------------
def _lstm_scan_kernel(H, tt, t_valid, gx_ref, whh_ref, h0_ref, c0_ref,
                      y_ref, hT_ref, cT_ref, h_scr, c_scr):
    t_pid = pl.program_id(1)

    @pl.when(t_pid == 0)
    def _():
        h_scr[...] = h0_ref[...]
        c_scr[...] = c0_ref[...]

    whh = whh_ref[...]  # (H, 4H) bf16, resident across the whole sweep

    def step(k, carry):
        h, c = carry                                       # (bb, H) f32
        z = gx_ref[k].astype(jnp.float32) + jnp.dot(
            h.astype(whh.dtype), whh,
            preferred_element_type=jnp.float32)            # (bb, 4H) one MXU op
        i = jax.nn.sigmoid(z[:, 0 * H:1 * H])
        f = jax.nn.sigmoid(z[:, 1 * H:2 * H])
        g = jnp.tanh(z[:, 2 * H:3 * H])
        o = jax.nn.sigmoid(z[:, 3 * H:4 * H])
        c_new = f * c + i * g
        h_new = o * jnp.tanh(c_new)
        y_ref[k] = h_new.astype(y_ref.dtype)
        if t_valid is not None:
            # Tail padding guard: keep carry frozen past the real sequence end.
            valid = (t_pid * tt + k) < t_valid
            h_new = jnp.where(valid, h_new, h)
            c_new = jnp.where(valid, c_new, c)
        return (h_new, c_new)

    h_fin, c_fin = jax.lax.fori_loop(
        0, tt, step, (h_scr[...], c_scr[...]), unroll=min(tt, 8))

    # Write scratch once per grid step (not per timestep).
    h_scr[...] = h_fin
    c_scr[...] = c_fin

    @pl.when(t_pid == pl.num_programs(1) - 1)
    def _():
        hT_ref[...] = h_fin
        cT_ref[...] = c_fin


def _choose_tt(T, bb, H, vmem_limit):
    """Time-block size + block count, sized from the VMEM budget."""
    fixed = 2 * (H * 4 * H * 2)            # whh bf16, double-buffered
    fixed += 4 * 2 * (bb * H * 4)          # h0/c0 in + hT/cT out, f32, db
    fixed += 2 * (bb * H * 4)              # h/c scratch
    per_tt = 2 * (bb * 4 * H * 2)          # gx bf16, db
    per_tt += 2 * (bb * H * 2)             # y bf16, db
    per_tt += bb * 4 * H * 4               # z temporaries (rough)
    budget = int(vmem_limit * 0.85) - fixed
    tt = budget // per_tt if budget > 0 else 1
    tt = int(max(1, min(tt, 128, T)))
    nblk = math.ceil(T / tt)
    tt = math.ceil(T / nblk)               # even split -> minimal tail padding
    return tt, nblk


def lstm_layer(x, w_ih, w_hh, b_ih, b_hh, h0, c0):
    """x: (T, B, In), torch-style weights -> (ys (T,B,H) bf16, h_T, c_T f32)."""
    T, B, In = x.shape
    H = h0.shape[-1]
    vmem_limit = _vmem_limit_bytes()

    # --- hoisted input projection: one batched bf16 matmul over all T*B rows,
    #     kept in the natural (T, B, 4H) layout (no transpose), streamed bf16.
    w_ih_t = w_ih.T.astype(jnp.bfloat16)                        # (In, 4H)
    bias = (b_ih + b_hh).astype(jnp.float32)                    # (4H,)
    gx = jnp.dot(x.reshape(T * B, In).astype(jnp.bfloat16), w_ih_t,
                 preferred_element_type=jnp.float32) + bias
    gx = gx.astype(jnp.bfloat16).reshape(T, B, 4 * H)

    # --- single lane-concatenated recurrent weight slab (H, 4H) bf16.
    whh_t = w_hh.T.astype(jnp.bfloat16)

    # --- batch blocking: shard the recurrence across TCs on v7x when B allows.
    nb = 2 if (B >= 16 and B % 16 == 0) else 1
    bb = B // nb

    # --- time blocking from the VMEM budget; pad T (tail masked in-kernel).
    tt, nblk = _choose_tt(T, bb, H, vmem_limit)
    Tp = tt * nblk
    if Tp != T:
        gx = jnp.pad(gx, ((0, Tp - T), (0, 0), (0, 0)))
    t_valid = T if Tp != T else None

    kernel = functools.partial(_lstm_scan_kernel, H, tt, t_valid)
    ys, h_t, c_t = pl.pallas_call(
        kernel,
        grid=(nb, nblk),
        in_specs=[
            pl.BlockSpec((tt, bb, 4 * H), lambda b, t: (t, b, 0)),
            pl.BlockSpec((H, 4 * H), lambda b, t: (0, 0)),
            pl.BlockSpec((bb, H), lambda b, t: (b, 0)),
            pl.BlockSpec((bb, H), lambda b, t: (b, 0)),
        ],
        out_specs=(
            pl.BlockSpec((tt, bb, H), lambda b, t: (t, b, 0)),
            pl.BlockSpec((bb, H), lambda b, t: (b, 0)),
            pl.BlockSpec((bb, H), lambda b, t: (b, 0)),
        ),
        out_shape=(
            jax.ShapeDtypeStruct((Tp, B, H), jnp.bfloat16),
            jax.ShapeDtypeStruct((B, H), jnp.float32),
            jax.ShapeDtypeStruct((B, H), jnp.float32),
        ),
        scratch_shapes=[pltpu.VMEM((bb, H), jnp.float32),
                        pltpu.VMEM((bb, H), jnp.float32)],
        compiler_params=pltpu.CompilerParams(
            dimension_semantics=("parallel", "arbitrary"),
            vmem_limit_bytes=vmem_limit),
    )(gx, whh_t, h0.astype(jnp.float32), c0.astype(jnp.float32))
    return ys[:T], h_t, c_t


# ----------------------------------------------------------------------------
# Mixture-of-Softmaxes head, row-tiled over N = T*B rows.
#   latent = tanh(h @ W_lat^T + b)  (all experts in ONE matmul)
#   per-expert decoder softmax, prior softmax, mixture into a VMEM accumulator.
# ----------------------------------------------------------------------------
def _mos_head_kernel(n_experts, ninp, h_ref, wlat_ref, blat_ref, wdec_ref,
                     bdec_ref, wpri_ref, logp_ref, prior_ref, acc_ref):
    h = h_ref[...]                                              # (tn, nhidlast) bf16

    pri = jax.nn.softmax(
        jnp.dot(h, wpri_ref[...], preferred_element_type=jnp.float32), axis=-1)
    prior_ref[...] = pri

    lat = jnp.tanh(
        jnp.dot(h, wlat_ref[...], preferred_element_type=jnp.float32)
        + blat_ref[...]).astype(jnp.bfloat16)                   # (tn, E*ninp)

    wdec = wdec_ref[...]                                        # (ninp, ntoken) bf16
    # Hoist the decoder-bias broadcast out of the expert loop.
    bd = jnp.broadcast_to(bdec_ref[...], logp_ref.shape).astype(jnp.float32)

    for e in range(n_experts):
        lat_e = lat[:, e * ninp:(e + 1) * ninp]                 # (tn, ninp)
        logit = jnp.dot(lat_e, wdec,
                        preferred_element_type=jnp.float32) + bd
        p = jax.nn.softmax(logit, axis=-1) * pri[:, e:e + 1]
        if e == 0:
            acc_ref[...] = p        # explicit VMEM accumulator (no spilled value)
        else:
            acc_ref[...] += p
    logp_ref[...] = jnp.log(acc_ref[...] + 1e-8)


def _choose_tn(N, nhidlast, ninp, ntoken, n_experts, vmem_limit):
    fixed = 2 * (nhidlast * n_experts * ninp * 2)      # w_latent^T bf16, db
    fixed += 2 * (ninp * ntoken * 2)                   # w_dec^T bf16, db
    fixed += 2 * (nhidlast * n_experts * 2)            # w_prior^T bf16, db
    fixed += 2 * ((n_experts * ninp + ntoken) * 4)     # biases
    per_tn = 2 * (nhidlast * 2)                        # h tile bf16, db
    per_tn += 2 * (ntoken * 4)                         # logp out f32, db
    per_tn += 2 * (n_experts * 4)                      # prior out f32, db
    per_tn += ntoken * 4                               # acc scratch
    per_tn += n_experts * ninp * 2 + 3 * ntoken * 4    # in-kernel temporaries
    budget = int(vmem_limit * 0.8) - fixed
    tn = budget // per_tn if budget > 0 else 8
    tn = int(max(8, min(tn, 512)))
    if N <= tn:
        return N
    return (tn // 8) * 8


def mos_head(h_flat, w_latent, b_latent, w_dec, b_dec, w_prior, n_experts):
    N, nhidlast = h_flat.shape
    ntoken, ninp = w_dec.shape
    vmem_limit = _vmem_limit_bytes()

    # Pre-transpose weights once on the wrapper side; bf16 for the MXU.
    w_lat_t = w_latent.T.astype(jnp.bfloat16)    # (nhidlast, E*ninp)
    w_dec_t = w_dec.T.astype(jnp.bfloat16)       # (ninp, ntoken)
    w_pri_t = w_prior.T.astype(jnp.bfloat16)     # (nhidlast, E)
    b_lat = b_latent.reshape(1, -1).astype(jnp.float32)
    b_d = b_dec.reshape(1, -1).astype(jnp.float32)

    tn = _choose_tn(N, nhidlast, ninp, ntoken, n_experts, vmem_limit)
    n_pad = ((N + tn - 1) // tn) * tn
    h_in = h_flat if n_pad == N else jnp.pad(h_flat, ((0, n_pad - N), (0, 0)))

    kernel = functools.partial(_mos_head_kernel, n_experts, ninp)
    logp, prior = pl.pallas_call(
        kernel,
        grid=(n_pad // tn,),
        in_specs=[
            pl.BlockSpec((tn, nhidlast), lambda i: (i, 0)),
            pl.BlockSpec((nhidlast, n_experts * ninp), lambda i: (0, 0)),
            pl.BlockSpec((1, n_experts * ninp), lambda i: (0, 0)),
            pl.BlockSpec((ninp, ntoken), lambda i: (0, 0)),
            pl.BlockSpec((1, ntoken), lambda i: (0, 0)),
            pl.BlockSpec((nhidlast, n_experts), lambda i: (0, 0)),
        ],
        out_specs=(
            pl.BlockSpec((tn, ntoken), lambda i: (i, 0)),
            pl.BlockSpec((tn, n_experts), lambda i: (i, 0)),
        ),
        out_shape=(
            jax.ShapeDtypeStruct((n_pad, ntoken), jnp.float32),
            jax.ShapeDtypeStruct((n_pad, n_experts), jnp.float32),
        ),
        scratch_shapes=[pltpu.VMEM((tn, ntoken), jnp.float32)],
        compiler_params=pltpu.CompilerParams(
            dimension_semantics=("parallel",),   # megacore shards row tiles
            vmem_limit_bytes=vmem_limit),
    )(h_in.astype(jnp.bfloat16), w_lat_t, b_lat, w_dec_t, b_d, w_pri_t)
    return logp[:N], prior[:N]


# ----------------------------------------------------------------------------
# Full forward (glue in plain JAX: embedding gather, reshapes, layer stacking).
# ----------------------------------------------------------------------------
def rnn_model_forward(params, tokens, hidden):
    # embedded_dropout / lockdrop are identity at eval.
    emb = jnp.take(params["encoder"], tokens, axis=0)    # (T, B, ninp)
    raw = emb
    new_hidden = []
    for l, lp in enumerate(params["lstm"]):
        h0 = hidden[l][0][0]
        c0 = hidden[l][1][0]
        raw, h_t, c_t = lstm_layer(raw, lp["w_ih"], lp["w_hh"],
                                   lp["b_ih"], lp["b_hh"], h0, c0)
        new_hidden.append((h_t[None], c_t[None]))

    T, B, nhidlast = raw.shape
    h_flat = raw.reshape(T * B, nhidlast)
    logp, prior = mos_head(h_flat, params["w_latent"], params["b_latent"],
                           params["w_dec"], params["b_dec"], params["w_prior"],
                           params["n_experts"])
    model_output = logp.reshape(T, B, -1)                # log_prob path
    return model_output, new_hidden


def init_params(key, ntoken, ninp, nhid, nhidlast, nlayers, n_experts):
    ks = jax.random.split(key, 8 + nlayers)
    params = {"n_experts": n_experts}
    params["encoder"] = jax.random.uniform(
        ks[0], (ntoken, ninp), jnp.float32, -0.1, 0.1)
    lstm = []
    for l in range(nlayers):
        in_dim = ninp if l == 0 else nhid
        hid = nhid if l != nlayers - 1 else nhidlast
        k1, k2, k3, k4 = jax.random.split(ks[1 + l], 4)
        s = 1.0 / math.sqrt(hid)
        lstm.append(dict(
            w_ih=jax.random.uniform(k1, (4 * hid, in_dim), jnp.float32, -s, s),
            w_hh=jax.random.uniform(k2, (4 * hid, hid), jnp.float32, -s, s),
            b_ih=jax.random.uniform(k3, (4 * hid,), jnp.float32, -s, s),
            b_hh=jax.random.uniform(k4, (4 * hid,), jnp.float32, -s, s)))
    params["lstm"] = lstm
    sp = 1.0 / math.sqrt(nhidlast)
    params["w_prior"] = jax.random.uniform(
        ks[nlayers + 1], (n_experts, nhidlast), jnp.float32, -sp, sp)
    params["w_latent"] = jax.random.uniform(
        ks[nlayers + 2], (n_experts * ninp, nhidlast), jnp.float32, -sp, sp)
    params["b_latent"] = jnp.zeros((n_experts * ninp,), jnp.float32)
    params["w_dec"] = jax.random.uniform(
        ks[nlayers + 3], (ntoken, ninp), jnp.float32, -0.1, 0.1)
    params["b_dec"] = jnp.zeros((ntoken,), jnp.float32)
    return params


if __name__ == "__main__":
    ntoken, ninp, nhid, nhidlast, nlayers, n_experts = 32, 16, 32, 16, 3, 4
    T, B = 8, 2

    key = jax.random.PRNGKey(0)
    kp, kt = jax.random.split(key)
    params = init_params(kp, ntoken, ninp, nhid, nhidlast, nlayers, n_experts)
    tokens = jax.random.randint(kt, (T, B), 0, ntoken, dtype=jnp.int32)

    # init_hidden(bsz): zeros, shape (1, B, nhid or nhidlast) per layer.
    hidden = [
        (jnp.zeros((1, B, nhid if l != nlayers - 1 else nhidlast), jnp.float32),
         jnp.zeros((1, B, nhid if l != nlayers - 1 else nhidlast), jnp.float32))
        for l in range(nlayers)
    ]

    model_output, new_hidden = rnn_model_forward(params, tokens, hidden)
    jax.block_until_ready(model_output)

    assert model_output.shape == (T, B, ntoken)
    assert all(h.shape == c.shape for (h, c) in new_hidden)
    assert bool(jnp.all(jnp.isfinite(model_output)))
    print("KERNEL_OK")
</pallas_src>

<mosaic_0001>
module attributes {stable_mosaic.version = 11 : i64} {
  func.func @_lstm_scan_kernel(%arg0: i32, %arg1: i32, %arg2: memref<8x2x128xbf16, #tpu.memory_space<vmem>>, %arg3: memref<32x128xbf16, #tpu.memory_space<vmem>>, %arg4: memref<2x32xf32, #tpu.memory_space<vmem>>, %arg5: memref<2x32xf32, #tpu.memory_space<vmem>>, %arg6: memref<8x2x32xbf16, #tpu.memory_space<vmem>>, %arg7: memref<2x32xf32, #tpu.memory_space<vmem>>, %arg8: memref<2x32xf32, #tpu.memory_space<vmem>>, %arg9: memref<2x32xf32, #tpu.memory_space<vmem>>, %arg10: memref<2x32xf32, #tpu.memory_space<vmem>>) attributes {dimension_semantics = [#tpu.dimension_semantics<parallel>, #tpu.dimension_semantics<arbitrary>], iteration_bounds = array<i64: 1, 1>, scalar_prefetch = 0 : i64, scratch_operands = 2 : i64, tpu.core_type = #tpu.core_type<tc>, window_params = [{transform_indices = @transform_0, window_bounds = array<i64: 8, 2, 128>}, {pipeline_mode = #tpu.pipeline_mode<synchronous>, transform_indices = @transform_1, window_bounds = array<i64: 32, 128>}, {transform_indices = @transform_2, window_bounds = array<i64: 2, 32>}, {transform_indices = @transform_3, window_bounds = array<i64: 2, 32>}, {transform_indices = @transform_4, window_bounds = array<i64: 8, 2, 32>}, {transform_indices = @transform_5, window_bounds = array<i64: 2, 32>}, {transform_indices = @transform_6, window_bounds = array<i64: 2, 32>}]} {
    %c0_i32 = arith.constant 0 : i32
    %0 = arith.cmpi eq, %arg1, %c0_i32 : i32
    %1 = arith.extui %0 : i1 to i32
    %c0_i32_0 = arith.constant 0 : i32
    %2 = arith.cmpi ne, %1, %c0_i32_0 : i32
    scf.if %2 {
      %c0_76 = arith.constant 0 : index
      %c0_77 = arith.constant 0 : index
      %307 = vector.load %arg4[%c0_76, %c0_77] : memref<2x32xf32, #tpu.memory_space<vmem>>, vector<2x32xf32>
      %c0_78 = arith.constant 0 : index
      %c0_79 = arith.constant 0 : index
      %308 = vector.load %arg9[%c0_78, %c0_79] : memref<2x32xf32, #tpu.memory_space<vmem>>, vector<2x32xf32>
      tpu.vector_store %arg9[%c0_78, %c0_79], %307 {strides = array<i32>} : memref<2x32xf32, #tpu.memory_space<vmem>>, vector<2x32xf32>,
      %c0_80 = arith.constant 0 : index
      %c0_81 = arith.constant 0 : index
      %309 = vector.load %arg5[%c0_80, %c0_81] : memref<2x32xf32, #tpu.memory_space<vmem>>, vector<2x32xf32>
      %c0_82 = arith.constant 0 : index
      %c0_83 = arith.constant 0 : index
      %310 = vector.load %arg10[%c0_82, %c0_83] : memref<2x32xf32, #tpu.memory_space<vmem>>, vector<2x32xf32>
      tpu.vector_store %arg10[%c0_82, %c0_83], %309 {strides = array<i32>} : memref<2x32xf32, #tpu.memory_space<vmem>>, vector<2x32xf32>,
    } else {
    }
    %c0 = arith.constant 0 : index
    %c0_1 = arith.constant 0 : index
    %3 = vector.load %arg3[%c0, %c0_1] : memref<32x128xbf16, #tpu.memory_space<vmem>>, vector<32x128xbf16>
    %c0_2 = arith.constant 0 : index
    %c0_3 = arith.constant 0 : index
    %4 = vector.load %arg9[%c0_2, %c0_3] : memref<2x32xf32, #tpu.memory_space<vmem>>, vector<2x32xf32>
    %c0_4 = arith.constant 0 : index
    %c0_5 = arith.constant 0 : index
    %5 = vector.load %arg10[%c0_4, %c0_5] : memref<2x32xf32, #tpu.memory_space<vmem>>, vector<2x32xf32>
    %c0_i32_6 = arith.constant 0 : i32
    %6 = arith.index_cast %c0_i32_6 : i32 to index
    %c0_7 = arith.constant 0 : index
    %c0_8 = arith.constant 0 : index
    %7 = vector.load %arg2[%6, %c0_7, %c0_8] : memref<8x2x128xbf16, #tpu.memory_space<vmem>>, vector<1x2x128xbf16>
    %8 = vector.shape_cast %7 : vector<1x2x128xbf16> to vector<2x128xbf16>
    %9 = arith.extf %8 : vector<2x128xbf16> to vector<2x128xf32>
    %10 = arith.truncf %4 : vector<2x32xf32> to vector<2x32xbf16>
    %cst = arith.constant dense<0.000000e+00> : vector<2x128xf32>
    %11 = tpu.matmul %10, %3, %cst {dimension_numbers = #tpu.dot_dimension_numbers<[1], [0], [0], [1], [0, 0, 1, 1], [], []>} : vector<2x32xbf16>, vector<32x128xbf16>, vector<2x128xf32> -> vector<2x128xf32>
    %12 = arith.addf %9, %11 : vector<2x128xf32>
    %13 = vector.extract_strided_slice %12 {offsets = [0, 0], sizes = [2, 32], strides = [1, 1]} : vector<2x128xf32> to vector<2x32xf32>
    %14 = arith.negf %13 : vector<2x32xf32>
    %15 = math.exp %14 : vector<2x32xf32>
    %cst_9 = arith.constant 1.000000e+00 : f32
    %16 = vector.broadcast %cst_9 : f32 to vector<2x32xf32>
    %17 = arith.addf %16, %15 : vector<2x32xf32>
    %18 = arith.divf %16, %17 : vector<2x32xf32>
    %19 = vector.extract_strided_slice %12 {offsets = [0, 32], sizes = [2, 32], strides = [1, 1]} : vector<2x128xf32> to vector<2x32xf32>
    %20 = arith.negf %19 : vector<2x32xf32>
    %21 = math.exp %20 : vector<2x32xf32>
    %cst_10 = arith.constant 1.000000e+00 : f32
    %22 = vector.broadcast %cst_10 : f32 to vector<2x32xf32>
    %23 = arith.addf %22, %21 : vector<2x32xf32>
    %24 = arith.divf %22, %23 : vector<2x32xf32>
    %25 = vector.extract_strided_slice %12 {offsets = [0, 64], sizes = [2, 32], strides = [1, 1]} : vector<2x128xf32> to vector<2x32xf32>
    %26 = math.tanh %25 : vector<2x32xf32>
    %27 = vector.extract_strided_slice %12 {offsets = [0, 96], sizes = [2, 32], strides = [1, 1]} : vector<2x128xf32> to vector<2x32xf32>
    %28 = arith.negf %27 : vector<2x32xf32>
    %29 = math.exp %28 : vector<2x32xf32>
    %cst_11 = arith.constant 1.000000e+00 : f32
    %30 = vector.broadcast %cst_11 : f32 to vector<2x32xf32>
    %31 = arith.addf %30, %29 : vector<2x32xf32>
    %32 = arith.divf %30, %31 : vector<2x32xf32>
    %33 = arith.mulf %24, %5 : vector<2x32xf32>
    %34 = arith.mulf %18, %26 : vector<2x32xf32>
    %35 = arith.addf %33, %34 : vector<2x32xf32>
    %36 = math.tanh %35 : vector<2x32xf32>
    %37 = arith.mulf %32, %36 : vector<2x32xf32>
    %38 = arith.truncf %37 : vector<2x32xf32> to vector<2x32xbf16>
    %39 = arith.index_cast %c0_i32_6 : i32 to index
    %c0_12 = arith.constant 0 : index
    %c0_13 = arith.constant 0 : index
    %40 = vector.load %arg6[%39, %c0_12, %c0_13] : memref<8x2x32xbf16, #tpu.memory_space<vmem>>, vector<1x2x32xbf16>
    %41 = vector.shape_cast %40 : vector<1x2x32xbf16> to vector<2x32xbf16>
    %42 = vector.shape_cast %38 : vector<2x32xbf16> to vector<1x2x32xbf16>
    tpu.vector_store %arg6[%39, %c0_12, %c0_13], %42 {strides = array<i32>} : memref<8x2x32xbf16, #tpu.memory_space<vmem>>, vector<1x2x32xbf16>,
    %c1_i32 = arith.constant 1 : i32
    %43 = arith.index_cast %c1_i32 : i32 to index
    %c0_14 = arith.constant 0 : index
    %c0_15 = arith.constant 0 : index
    %44 = vector.load %arg2[%43, %c0_14, %c0_15] : memref<8x2x128xbf16, #tpu.memory_space<vmem>>, vector<1x2x128xbf16>
    %45 = vector.shape_cast %44 : vector<1x2x128xbf16> to vector<2x128xbf16>
    %46 = arith.extf %45 : vector<2x128xbf16> to vector<2x128xf32>
    %47 = arith.truncf %37 : vector<2x32xf32> to vector<2x32xbf16>
    %cst_16 = arith.constant dense<0.000000e+00> : vector<2x128xf32>
    %48 = tpu.matmul %47, %3, %cst_16 {dimension_numbers = #tpu.dot_dimension_numbers<[1], [0], [0], [1], [0, 0, 1, 1], [], []>} : vector<2x32xbf16>, vector<32x128xbf16>, vector<2x128xf32> -> vector<2x128xf32>
    %49 = arith.addf %46, %48 : vector<2x128xf32>
    %50 = vector.extract_strided_slice %49 {offsets = [0, 0], sizes = [2, 32], strides = [1, 1]} : vector<2x128xf32> to vector<2x32xf32>
    %51 = arith.negf %50 : vector<2x32xf32>
    %52 = math.exp %51 : vector<2x32xf32>
    %cst_17 = arith.constant 1.000000e+00 : f32
    %53 = vector.broadcast %cst_17 : f32 to vector<2x32xf32>
    %54 = arith.addf %53, %52 : vector<2x32xf32>
    %55 = arith.divf %53, %54 : vector<2x32xf32>
    %56 = vector.extract_strided_slice %49 {offsets = [0, 32], sizes = [2, 32], strides = [1, 1]} : vector<2x128xf32> to vector<2x32xf32>
    %57 = arith.negf %56 : vector<2x32xf32>
    %58 = math.exp %57 : vector<2x32xf32>
    %cst_18 = arith.constant 1.000000e+00 : f32
    %59 = vector.broadcast %cst_18 : f32 to vector<2x32xf32>
    %60 = arith.addf %59, %58 : vector<2x32xf32>
    %61 = arith.divf %59, %60 : vector<2x32xf32>
    %62 = vector.extract_strided_slice %49 {offsets = [0, 64], sizes = [2, 32], strides = [1, 1]} : vector<2x128xf32> to vector<2x32xf32>
    %63 = math.tanh %62 : vector<2x32xf32>
    %64 = vector.extract_strided_slice %49 {offsets = [0, 96], sizes = [2, 32], strides = [1, 1]} : vector<2x128xf32> to vector<2x32xf32>
    %65 = arith.negf %64 : vector<2x32xf32>
    %66 = math.exp %65 : vector<2x32xf32>
    %cst_19 = arith.constant 1.000000e+00 : f32
    %67 = vector.broadcast %cst_19 : f32 to vector<2x32xf32>
    %68 = arith.addf %67, %66 : vector<2x32xf32>
    %69 = arith.divf %67, %68 : vector<2x32xf32>
    %70 = arith.mulf %61, %35 : vector<2x32xf32>
    %71 = arith.mulf %55, %63 : vector<2x32xf32>
    %72 = arith.addf %70, %71 : vector<2x32xf32>
    %73 = math.tanh %72 : vector<2x32xf32>
    %74 = arith.mulf %69, %73 : vector<2x32xf32>
    %75 = arith.truncf %74 : vector<2x32xf32> to vector<2x32xbf16>
    %76 = arith.index_cast %c1_i32 : i32 to index
    %c0_20 = arith.constant 0 : index
    %c0_21 = arith.constant 0 : index
    %77 = vector.load %arg6[%76, %c0_20, %c0_21] : memref<8x2x32xbf16, #tpu.memory_space<vmem>>, vector<1x2x32xbf16>
    %78 = vector.shape_cast %77 : vector<1x2x32xbf16> to vector<2x32xbf16>
    %79 = vector.shape_cast %75 : vector<2x32xbf16> to vector<1x2x32xbf16>
    tpu.vector_store %arg6[%76, %c0_20, %c0_21], %79 {strides = array<i32>} : memref<8x2x32xbf16, #tpu.memory_space<vmem>>, vector<1x2x32xbf16>,
    %c2_i32 = arith.constant 2 : i32
    %80 = arith.index_cast %c2_i32 : i32 to index
    %c0_22 = arith.constant 0 : index
    %c0_23 = arith.constant 0 : index
    %81 = vector.load %arg2[%80, %c0_22, %c0_23] : memref<8x2x128xbf16, #tpu.memory_space<vmem>>, vector<1x2x128xbf16>
    %82 = vector.shape_cast %81 : vector<1x2x128xbf16> to vector<2x128xbf16>
    %83 = arith.extf %82 : vector<2x128xbf16> to vector<2x128xf32>
    %84 = arith.truncf %74 : vector<2x32xf32> to vector<2x32xbf16>
    %cst_24 = arith.constant dense<0.000000e+00> : vector<2x128xf32>
    %85 = tpu.matmul %84, %3, %cst_24 {dimension_numbers = #tpu.dot_dimension_numbers<[1], [0], [0], [1], [0, 0, 1, 1], [], []>} : vector<2x32xbf16>, vector<32x128xbf16>, vector<2x128xf32> -> vector<2x128xf32>
    %86 = arith.addf %83, %85 : vector<2x128xf32>
    %87 = vector.extract_strided_slice %86 {offsets = [0, 0], sizes = [2, 32], strides = [1, 1]} : vector<2x128xf32> to vector<2x32xf32>
    %88 = arith.negf %87 : vector<2x32xf32>
    %89 = math.exp %88 : vector<2x32xf32>
    %cst_25 = arith.constant 1.000000e+00 : f32
    %90 = vector.broadcast %cst_25 : f32 to vector<2x32xf32>
    %91 = arith.addf %90, %89 : vector<2x32xf32>
    %92 = arith.divf %90, %91 : vector<2x32xf32>
    %93 = vector.extract_strided_slice %86 {offsets = [0, 32], sizes = [2, 32], strides = [1, 1]} : vector<2x128xf32> to vector<2x32xf32>
    %94 = arith.negf %93 : vector<2x32xf32>
    %95 = math.exp %94 : vector<2x32xf32>
    %cst_26 = arith.constant 1.000000e+00 : f32
    %96 = vector.broadcast %cst_26 : f32 to vector<2x32xf32>
    %97 = arith.addf %96, %95 : vector<2x32xf32>
    %98 = arith.divf %96, %97 : vector<2x32xf32>
    %99 = vector.extract_strided_slice %86 {offsets = [0, 64], sizes = [2, 32], strides = [1, 1]} : vector<2x128xf32> to vector<2x32xf32>
    %100 = math.tanh %99 : vector<2x32xf32>
    %101 = vector.extract_strided_slice %86 {offsets = [0, 96], sizes = [2, 32], strides = [1, 1]} : vector<2x128xf32> to vector<2x32xf32>
    %102 = arith.negf %101 : vector<2x32xf32>
    %103 = math.exp %102 : vector<2x32xf32>
    %cst_27 = arith.constant 1.000000e+00 : f32
    %104 = vector.broadcast %cst_27 : f32 to vector<2x32xf32>
    %105 = arith.addf %104, %103 : vector<2x32xf32>
    %106 = arith.divf %104, %105 : vector<2x32xf32>
    %107 = arith.mulf %98, %72 : vector<2x32xf32>
    %108 = arith.mulf %92, %100 : vector<2x32xf32>
    %109 = arith.addf %107, %108 : vector<2x32xf32>
    %110 = math.tanh %109 : vector<2x32xf32>
    %111 = arith.mulf %106, %110 : vector<2x32xf32>
    %112 = arith.truncf %111 : vector<2x32xf32> to vector<2x32xbf16>
    %113 = arith.index_cast %c2_i32 : i32 to index
    %c0_28 = arith.constant 0 : index
    %c0_29 = arith.constant 0 : index
    %114 = vector.load %arg6[%113, %c0_28, %c0_29] : memref<8x2x32xbf16, #tpu.memory_space<vmem>>, vector<1x2x32xbf16>
    %115 = vector.shape_cast %114 : vector<1x2x32xbf16> to vector<2x32xbf16>
    %116 = vector.shape_cast %112 : vector<2x32xbf16> to vector<1x2x32xbf16>
    tpu.vector_store %arg6[%113, %c0_28, %c0_29], %116 {strides = array<i32>} : memref<8x2x32xbf16, #tpu.memory_space<vmem>>, vector<1x2x32xbf16>,
    %c3_i32 = arith.constant 3 : i32
    %117 = arith.index_cast %c3_i32 : i32 to index
    %c0_30 = arith.constant 0 : index
    %c0_31 = arith.constant 0 : index
    %118 = vector.load %arg2[%117, %c0_30, %c0_31] : memref<8x2x128xbf16, #tpu.memory_space<vmem>>, vector<1x2x128xbf16>
    %119 = vector.shape_cast %118 : vector<1x2x128xbf16> to vector<2x128xbf16>
    %120 = arith.extf %119 : vector<2x128xbf16> to vector<2x128xf32>
    %121 = arith.truncf %111 : vector<2x32xf32> to vector<2x32xbf16>
    %cst_32 = arith.constant dense<0.000000e+00> : vector<2x128xf32>
    %122 = tpu.matmul %121, %3, %cst_32 {dimension_numbers = #tpu.dot_dimension_numbers<[1], [0], [0], [1], [0, 0, 1, 1], [], []>} : vector<2x32xbf16>, vector<32x128xbf16>, vector<2x128xf32> -> vector<2x128xf32>
    %123 = arith.addf %120, %122 : vector<2x128xf32>
    %124 = vector.extract_strided_slice %123 {offsets = [0, 0], sizes = [2, 32], strides = [1, 1]} : vector<2x128xf32> to vector<2x32xf32>
    %125 = arith.negf %124 : vector<2x32xf32>
    %126 = math.exp %125 : vector<2x32xf32>
    %cst_33 = arith.constant 1.000000e+00 : f32
    %127 = vector.broadcast %cst_33 : f32 to vector<2x32xf32>
    %128 = arith.addf %127, %126 : vector<2x32xf32>
    %129 = arith.divf %127, %128 : vector<2x32xf32>
    %130 = vector.extract_strided_slice %123 {offsets = [0, 32], sizes = [2, 32], strides = [1, 1]} : vector<2x128xf32> to vector<2x32xf32>
    %131 = arith.negf %130 : vector<2x32xf32>
    %132 = math.exp %131 : vector<2x32xf32>
    %cst_34 = arith.constant 1.000000e+00 : f32
    %133 = vector.broadcast %cst_34 : f32 to vector<2x32xf32>
    %134 = arith.addf %133, %132 : vector<2x32xf32>
    %135 = arith.divf %133, %134 : vector<2x32xf32>
    %136 = vector.extract_strided_slice %123 {offsets = [0, 64], sizes = [2, 32], strides = [1, 1]} : vector<2x128xf32> to vector<2x32xf32>
    %137 = math.tanh %136 : vector<2x32xf32>
    %138 = vector.extract_strided_slice %123 {offsets = [0, 96], sizes = [2, 32], strides = [1, 1]} : vector<2x128xf32> to vector<2x32xf32>
    %139 = arith.negf %138 : vector<2x32xf32>
    %140 = math.exp %139 : vector<2x32xf32>
    %cst_35 = arith.constant 1.000000e+00 : f32
    %141 = vector.broadcast %cst_35 : f32 to vector<2x32xf32>
    %142 = arith.addf %141, %140 : vector<2x32xf32>
    %143 = arith.divf %141, %142 : vector<2x32xf32>
    %144 = arith.mulf %135, %109 : vector<2x32xf32>
    %145 = arith.mulf %129, %137 : vector<2x32xf32>
    %146 = arith.addf %144, %145 : vector<2x32xf32>
    %147 = math.tanh %146 : vector<2x32xf32>
    %148 = arith.mulf %143, %147 : vector<2x32xf32>
    %149 = arith.truncf %148 : vector<2x32xf32> to vector<2x32xbf16>
    %150 = arith.index_cast %c3_i32 : i32 to index
    %c0_36 = arith.constant 0 : index
    %c0_37 = arith.constant 0 : index
    %151 = vector.load %arg6[%150, %c0_36, %c0_37] : memref<8x2x32xbf16, #tpu.memory_space<vmem>>, vector<1x2x32xbf16>
    %152 = vector.shape_cast %151 : vector<1x2x32xbf16> to vector<2x32xbf16>
    %153 = vector.shape_cast %149 : vector<2x32xbf16> to vector<1x2x32xbf16>
    tpu.vector_store %arg6[%150, %c0_36, %c0_37], %153 {strides = array<i32>} : memref<8x2x32xbf16, #tpu.memory_space<vmem>>, vector<1x2x32xbf16>,
    %c4_i32 = arith.constant 4 : i32
    %154 = arith.index_cast %c4_i32 : i32 to index
    %c0_38 = arith.constant 0 : index
    %c0_39 = arith.constant 0 : index
    %155 = vector.load %arg2[%154, %c0_38, %c0_39] : memref<8x2x128xbf16, #tpu.memory_space<vmem>>, vector<1x2x128xbf16>
    %156 = vector.shape_cast %155 : vector<1x2x128xbf16> to vector<2x128xbf16>
    %157 = arith.extf %156 : vector<2x128xbf16> to vector<2x128xf32>
    %158 = arith.truncf %148 : vector<2x32xf32> to vector<2x32xbf16>
    %cst_40 = arith.constant dense<0.000000e+00> : vector<2x128xf32>
    %159 = tpu.matmul %158, %3, %cst_40 {dimension_numbers = #tpu.dot_dimension_numbers<[1], [0], [0], [1], [0, 0, 1, 1], [], []>} : vector<2x32xbf16>, vector<32x128xbf16>, vector<2x128xf32> -> vector<2x128xf32>
    %160 = arith.addf %157, %159 : vector<2x128xf32>
    %161 = vector.extract_strided_slice %160 {offsets = [0, 0], sizes = [2, 32], strides = [1, 1]} : vector<2x128xf32> to vector<2x32xf32>
    %162 = arith.negf %161 : vector<2x32xf32>
    %163 = math.exp %162 : vector<2x32xf32>
    %cst_41 = arith.constant 1.000000e+00 : f32
    %164 = vector.broadcast %cst_41 : f32 to vector<2x32xf32>
    %165 = arith.addf %164, %163 : vector<2x32xf32>
    %166 = arith.divf %164, %165 : vector<2x32xf32>
    %167 = vector.extract_strided_slice %160 {offsets = [0, 32], sizes = [2, 32], strides = [1, 1]} : vector<2x128xf32> to vector<2x32xf32>
    %168 = arith.negf %167 : vector<2x32xf32>
    %169 = math.exp %168 : vector<2x32xf32>
    %cst_42 = arith.constant 1.000000e+00 : f32
    %170 = vector.broadcast %cst_42 : f32 to vector<2x32xf32>
    %171 = arith.addf %170, %169 : vector<2x32xf32>
    %172 = arith.divf %170, %171 : vector<2x32xf32>
    %173 = vector.extract_strided_slice %160 {offsets = [0, 64], sizes = [2, 32], strides = [1, 1]} : vector<2x128xf32> to vector<2x32xf32>
    %174 = math.tanh %173 : vector<2x32xf32>
    %175 = vector.extract_strided_slice %160 {offsets = [0, 96], sizes = [2, 32], strides = [1, 1]} : vector<2x128xf32> to vector<2x32xf32>
    %176 = arith.negf %175 : vector<2x32xf32>
    %177 = math.exp %176 : vector<2x32xf32>
    %cst_43 = arith.constant 1.000000e+00 : f32
    %178 = vector.broadcast %cst_43 : f32 to vector<2x32xf32>
    %179 = arith.addf %178, %177 : vector<2x32xf32>
    %180 = arith.divf %178, %179 : vector<2x32xf32>
    %181 = arith.mulf %172, %146 : vector<2x32xf32>
    %182 = arith.mulf %166, %174 : vector<2x32xf32>
    %183 = arith.addf %181, %182 : vector<2x32xf32>
    %184 = math.tanh %183 : vector<2x32xf32>
    %185 = arith.mulf %180, %184 : vector<2x32xf32>
    %186 = arith.truncf %185 : vector<2x32xf32> to vector<2x32xbf16>
    %187 = arith.index_cast %c4_i32 : i32 to index
    %c0_44 = arith.constant 0 : index
    %c0_45 = arith.constant 0 : index
    %188 = vector.load %arg6[%187, %c0_44, %c0_45] : memref<8x2x32xbf16, #tpu.memory_space<vmem>>, vector<1x2x32xbf16>
    %189 = vector.shape_cast %188 : vector<1x2x32xbf16> to vector<2x32xbf16>
    %190 = vector.shape_cast %186 : vector<2x32xbf16> to vector<1x2x32xbf16>
    tpu.vector_store %arg6[%187, %c0_44, %c0_45], %190 {strides = array<i32>} : memref<8x2x32xbf16, #tpu.memory_space<vmem>>, vector<1x2x32xbf16>,
    %c5_i32 = arith.constant 5 : i32
    %191 = arith.index_cast %c5_i32 : i32 to index
    %c0_46 = arith.constant 0 : index
    %c0_47 = arith.constant 0 : index
    %192 = vector.load %arg2[%191, %c0_46, %c0_47] : memref<8x2x128xbf16, #tpu.memory_space<vmem>>, vector<1x2x128xbf16>
    %193 = vector.shape_cast %192 : vector<1x2x128xbf16> to vector<2x128xbf16>
    %194 = arith.extf %193 : vector<2x128xbf16> to vector<2x128xf32>
    %195 = arith.truncf %185 : vector<2x32xf32> to vector<2x32xbf16>
    %cst_48 = arith.constant dense<0.000000e+00> : vector<2x128xf32>
    %196 = tpu.matmul %195, %3, %cst_48 {dimension_numbers = #tpu.dot_dimension_numbers<[1], [0], [0], [1], [0, 0, 1, 1], [], []>} : vector<2x32xbf16>, vector<32x128xbf16>, vector<2x128xf32> -> vector<2x128xf32>
    %197 = arith.addf %194, %196 : vector<2x128xf32>
    %198 = vector.extract_strided_slice %197 {offsets = [0, 0], sizes = [2, 32], strides = [1, 1]} : vector<2x128xf32> to vector<2x32xf32>
    %199 = arith.negf %198 : vector<2x32xf32>
    %200 = math.exp %199 : vector<2x32xf32>
    %cst_49 = arith.constant 1.000000e+00 : f32
    %201 = vector.broadcast %cst_49 : f32 to vector<2x32xf32>
    %202 = arith.addf %201, %200 : vector<2x32xf32>
    %203 = arith.divf %201, %202 : vector<2x32xf32>
    %204 = vector.extract_strided_slice %197 {offsets = [0, 32], sizes = [2, 32], strides = [1, 1]} : vector<2x128xf32> to vector<2x32xf32>
    %205 = arith.negf %204 : vector<2x32xf32>
    %206 = math.exp %205 : vector<2x32xf32>
    %cst_50 = arith.constant 1.000000e+00 : f32
    %207 = vector.broadcast %cst_50 : f32 to vector<2x32xf32>
    %208 = arith.addf %207, %206 : vector<2x32xf32>
    %209 = arith.divf %207, %208 : vector<2x32xf32>
    %210 = vector.extract_strided_slice %197 {offsets = [0, 64], sizes = [2, 32], strides = [1, 1]} : vector<2x128xf32> to vector<2x32xf32>
    %211 = math.tanh %210 : vector<2x32xf32>
    %212 = vector.extract_strided_slice %197 {offsets = [0, 96], sizes = [2, 32], strides = [1, 1]} : vector<2x128xf32> to vector<2x32xf32>
    %213 = arith.negf %212 : vector<2x32xf32>
    %214 = math.exp %213 : vector<2x32xf32>
    %cst_51 = arith.constant 1.000000e+00 : f32
    %215 = vector.broadcast %cst_51 : f32 to vector<2x32xf32>
    %216 = arith.addf %215, %214 : vector<2x32xf32>
    %217 = arith.divf %215, %216 : vector<2x32xf32>
    %218 = arith.mulf %209, %183 : vector<2x32xf32>
    %219 = arith.mulf %203, %211 : vector<2x32xf32>
    %220 = arith.addf %218, %219 : vector<2x32xf32>
    %221 = math.tanh %220 : vector<2x32xf32>
    %222 = arith.mulf %217, %221 : vector<2x32xf32>
    %223 = arith.truncf %222 : vector<2x32xf32> to vector<2x32xbf16>
    %224 = arith.index_cast %c5_i32 : i32 to index
    %c0_52 = arith.constant 0 : index
    %c0_53 = arith.constant 0 : index
    %225 = vector.load %arg6[%224, %c0_52, %c0_53] : memref<8x2x32xbf16, #tpu.memory_space<vmem>>, vector<1x2x32xbf16>
    %226 = vector.shape_cast %225 : vector<1x2x32xbf16> to vector<2x32xbf16>
    %227 = vector.shape_cast %223 : vector<2x32xbf16> to vector<1x2x32xbf16>
    tpu.vector_store %arg6[%224, %c0_52, %c0_53], %227 {strides = array<i32>} : memref<8x2x32xbf16, #tpu.memory_space<vmem>>, vector<1x2x32xbf16>,
    %c6_i32 = arith.constant 6 : i32
    %228 = arith.index_cast %c6_i32 : i32 to index
    %c0_54 = arith.constant 0 : index
    %c0_55 = arith.constant 0 : index
    %229 = vector.load %arg2[%228, %c0_54, %c0_55] : memref<8x2x128xbf16, #tpu.memory_space<vmem>>, vector<1x2x128xbf16>
    %230 = vector.shape_cast %229 : vector<1x2x128xbf16> to vector<2x128xbf16>
    %231 = arith.extf %230 : vector<2x128xbf16> to vector<2x128xf32>
    %232 = arith.truncf %222 : vector<2x32xf32> to vector<2x32xbf16>
    %cst_56 = arith.constant dense<0.000000e+00> : vector<2x128xf32>
    %233 = tpu.matmul %232, %3, %cst_56 {dimension_numbers = #tpu.dot_dimension_numbers<[1], [0], [0], [1], [0, 0, 1, 1], [], []>} : vector<2x32xbf16>, vector<32x128xbf16>, vector<2x128xf32> -> vector<2x128xf32>
    %234 = arith.addf %231, %233 : vector<2x128xf32>
    %235 = vector.extract_strided_slice %234 {offsets = [0, 0], sizes = [2, 32], strides = [1, 1]} : vector<2x128xf32> to vector<2x32xf32>
    %236 = arith.negf %235 : vector<2x32xf32>
    %237 = math.exp %236 : vector<2x32xf32>
    %cst_57 = arith.constant 1.000000e+00 : f32
    %238 = vector.broadcast %cst_57 : f32 to vector<2x32xf32>
    %239 = arith.addf %238, %237 : vector<2x32xf32>
    %240 = arith.divf %238, %239 : vector<2x32xf32>
    %241 = vector.extract_strided_slice %234 {offsets = [0, 32], sizes = [2, 32], strides = [1, 1]} : vector<2x128xf32> to vector<2x32xf32>
    %242 = arith.negf %241 : vector<2x32xf32>
    %243 = math.exp %242 : vector<2x32xf32>
    %cst_58 = arith.constant 1.000000e+00 : f32
    %244 = vector.broadcast %cst_58 : f32 to vector<2x32xf32>
    %245 = arith.addf %244, %243 : vector<2x32xf32>
    %246 = arith.divf %244, %245 : vector<2x32xf32>
    %247 = vector.extract_strided_slice %234 {offsets = [0, 64], sizes = [2, 32], strides = [1, 1]} : vector<2x128xf32> to vector<2x32xf32>
    %248 = math.tanh %247 : vector<2x32xf32>
    %249 = vector.extract_strided_slice %234 {offsets = [0, 96], sizes = [2, 32], strides = [1, 1]} : vector<2x128xf32> to vector<2x32xf32>
    %250 = arith.negf %249 : vector<2x32xf32>
    %251 = math.exp %250 : vector<2x32xf32>
    %cst_59 = arith.constant 1.000000e+00 : f32
    %252 = vector.broadcast %cst_59 : f32 to vector<2x32xf32>
    %253 = arith.addf %252, %251 : vector<2x32xf32>
    %254 = arith.divf %252, %253 : vector<2x32xf32>
    %255 = arith.mulf %246, %220 : vector<2x32xf32>
    %256 = arith.mulf %240, %248 : vector<2x32xf32>
    %257 = arith.addf %255, %256 : vector<2x32xf32>
    %258 = math.tanh %257 : vector<2x32xf32>
    %259 = arith.mulf %254, %258 : vector<2x32xf32>
    %260 = arith.truncf %259 : vector<2x32xf32> to vector<2x32xbf16>
    %261 = arith.index_cast %c6_i32 : i32 to index
    %c0_60 = arith.constant 0 : index
    %c0_61 = arith.constant 0 : index
    %262 = vector.load %arg6[%261, %c0_60, %c0_61] : memref<8x2x32xbf16, #tpu.memory_space<vmem>>, vector<1x2x32xbf16>
    %263 = vector.shape_cast %262 : vector<1x2x32xbf16> to vector<2x32xbf16>
    %264 = vector.shape_cast %260 : vector<2x32xbf16> to vector<1x2x32xbf16>
    tpu.vector_store %arg6[%261, %c0_60, %c0_61], %264 {strides = array<i32>} : memref<8x2x32xbf16, #tpu.memory_space<vmem>>, vector<1x2x32xbf16>,
    %c7_i32 = arith.constant 7 : i32
    %265 = arith.index_cast %c7_i32 : i32 to index
    %c0_62 = arith.constant 0 : index
    %c0_63 = arith.constant 0 : index
    %266 = vector.load %arg2[%265, %c0_62, %c0_63] : memref<8x2x128xbf16, #tpu.memory_space<vmem>>, vector<1x2x128xbf16>
    %267 = vector.shape_cast %266 : vector<1x2x128xbf16> to vector<2x128xbf16>
    %268 = arith.extf %267 : vector<2x128xbf16> to vector<2x128xf32>
    %269 = arith.truncf %259 : vector<2x32xf32> to vector<2x32xbf16>
    %cst_64 = arith.constant dense<0.000000e+00> : vector<2x128xf32>
    %270 = tpu.matmul %269, %3, %cst_64 {dimension_numbers = #tpu.dot_dimension_numbers<[1], [0], [0], [1], [0, 0, 1, 1], [], []>} : vector<2x32xbf16>, vector<32x128xbf16>, vector<2x128xf32> -> vector<2x128xf32>
    %271 = arith.addf %268, %270 : vector<2x128xf32>
    %272 = vector.extract_strided_slice %271 {offsets = [0, 0], sizes = [2, 32], strides = [1, 1]} : vector<2x128xf32> to vector<2x32xf32>
    %273 = arith.negf %272 : vector<2x32xf32>
    %274 = math.exp %273 : vector<2x32xf32>
    %cst_65 = arith.constant 1.000000e+00 : f32
    %275 = vector.broadcast %cst_65 : f32 to vector<2x32xf32>
    %276 = arith.addf %275, %274 : vector<2x32xf32>
    %277 = arith.divf %275, %276 : vector<2x32xf32>
    %278 = vector.extract_strided_slice %271 {offsets = [0, 32], sizes = [2, 32], strides = [1, 1]} : vector<2x128xf32> to vector<2x32xf32>
    %279 = arith.negf %278 : vector<2x32xf32>
    %280 = math.exp %279 : vector<2x32xf32>
    %cst_66 = arith.constant 1.000000e+00 : f32
    %281 = vector.broadcast %cst_66 : f32 to vector<2x32xf32>
    %282 = arith.addf %281, %280 : vector<2x32xf32>
    %283 = arith.divf %281, %282 : vector<2x32xf32>
    %284 = vector.extract_strided_slice %271 {offsets = [0, 64], sizes = [2, 32], strides = [1, 1]} : vector<2x128xf32> to vector<2x32xf32>
    %285 = math.tanh %284 : vector<2x32xf32>
    %286 = vector.extract_strided_slice %271 {offsets = [0, 96], sizes = [2, 32], strides = [1, 1]} : vector<2x128xf32> to vector<2x32xf32>
    %287 = arith.negf %286 : vector<2x32xf32>
    %288 = math.exp %287 : vector<2x32xf32>
    %cst_67 = arith.constant 1.000000e+00 : f32
    %289 = vector.broadcast %cst_67 : f32 to vector<2x32xf32>
    %290 = arith.addf %289, %288 : vector<2x32xf32>
    %291 = arith.divf %289, %290 : vector<2x32xf32>
    %292 = arith.mulf %283, %257 : vector<2x32xf32>
    %293 = arith.mulf %277, %285 : vector<2x32xf32>
    %294 = arith.addf %292, %293 : vector<2x32xf32>
    %295 = math.tanh %294 : vector<2x32xf32>
    %296 = arith.mulf %291, %295 : vector<2x32xf32>
    %297 = arith.truncf %296 : vector<2x32xf32> to vector<2x32xbf16>
    %298 = arith.index_cast %c7_i32 : i32 to index
    %c0_68 = arith.constant 0 : index
    %c0_69 = arith.constant 0 : index
    %299 = vector.load %arg6[%298, %c0_68, %c0_69] : memref<8x2x32xbf16, #tpu.memory_space<vmem>>, vector<1x2x32xbf16>
    %300 = vector.shape_cast %299 : vector<1x2x32xbf16> to vector<2x32xbf16>
    %301 = vector.shape_cast %297 : vector<2x32xbf16> to vector<1x2x32xbf16>
    tpu.vector_store %arg6[%298, %c0_68, %c0_69], %301 {strides = array<i32>} : memref<8x2x32xbf16, #tpu.memory_space<vmem>>, vector<1x2x32xbf16>,
    %c8_i32 = arith.constant 8 : i32
    %c0_70 = arith.constant 0 : index
    %c0_71 = arith.constant 0 : index
    %302 = vector.load %arg9[%c0_70, %c0_71] : memref<2x32xf32, #tpu.memory_space<vmem>>, vector<2x32xf32>
    tpu.vector_store %arg9[%c0_70, %c0_71], %296 {strides = array<i32>} : memref<2x32xf32, #tpu.memory_space<vmem>>, vector<2x32xf32>,
    %c0_72 = arith.constant 0 : index
    %c0_73 = arith.constant 0 : index
    %303 = vector.load %arg10[%c0_72, %c0_73] : memref<2x32xf32, #tpu.memory_space<vmem>>, vector<2x32xf32>
    tpu.vector_store %arg10[%c0_72, %c0_73], %294 {strides = array<i32>} : memref<2x32xf32, #tpu.memory_space<vmem>>, vector<2x32xf32>,
    %c0_i32_74 = arith.constant 0 : i32
    %304 = arith.cmpi eq, %arg1, %c0_i32_74 : i32
    %305 = arith.extui %304 : i1 to i32
    %c0_i32_75 = arith.constant 0 : i32
    %306 = arith.cmpi ne, %305, %c0_i32_75 : i32
    scf.if %306 {
      %c0_76 = arith.constant 0 : index
      %c0_77 = arith.constant 0 : index
      %307 = vector.load %arg7[%c0_76, %c0_77] : memref<2x32xf32, #tpu.memory_space<vmem>>, vector<2x32xf32>
      tpu.vector_store %arg7[%c0_76, %c0_77], %296 {strides = array<i32>} : memref<2x32xf32, #tpu.memory_space<vmem>>, vector<2x32xf32>,
      %c0_78 = arith.constant 0 : index
      %c0_79 = arith.constant 0 : index
      %308 = vector.load %arg8[%c0_78, %c0_79] : memref<2x32xf32, #tpu.memory_space<vmem>>, vector<2x32xf32>
      tpu.vector_store %arg8[%c0_78, %c0_79], %294 {strides = array<i32>} : memref<2x32xf32, #tpu.memory_space<vmem>>, vector<2x32xf32>,
    } else {
    }
    return
  }
  func.func @transform_0(%arg0: i32, %arg1: i32) -> (i32, i32, i32) {
    %c0_i32 = arith.constant 0 : i32
    %c0_i32_0 = arith.constant 0 : i32
    return %arg1, %arg0, %c0_i32 : i32, i32, i32
  }
  func.func @transform_1(%arg0: i32, %arg1: i32) -> (i32, i32) {
    %c0_i32 = arith.constant 0 : i32
    %c0_i32_0 = arith.constant 0 : i32
    %c0_i32_1 = arith.constant 0 : i32
    return %c0_i32, %c0_i32_0 : i32, i32
  }
  func.func @transform_2(%arg0: i32, %arg1: i32) -> (i32, i32) {
    %c0_i32 = arith.constant 0 : i32
    %c0_i32_0 = arith.constant 0 : i32
    return %arg0, %c0_i32 : i32, i32
  }
  func.func @transform_3(%arg0: i32, %arg1: i32) -> (i32, i32) {
    %c0_i32 = arith.constant 0 : i32
    %c0_i32_0 = arith.constant 0 : i32
    return %arg0, %c0_i32 : i32, i32
  }
  func.func @transform_4(%arg0: i32, %arg1: i32) -> (i32, i32, i32) {
    %c0_i32 = arith.constant 0 : i32
    %c0_i32_0 = arith.constant 0 : i32
    return %arg1, %arg0, %c0_i32 : i32, i32, i32
  }
  func.func @transform_5(%arg0: i32, %arg1: i32) -> (i32, i32) {
    %c0_i32 = arith.constant 0 : i32
    %c0_i32_0 = arith.constant 0 : i32
    return %arg0, %c0_i32 : i32, i32
  }
  func.func @transform_6(%arg0: i32, %arg1: i32) -> (i32, i32) {
    %c0_i32 = arith.constant 0 : i32
    %c0_i32_0 = arith.constant 0 : i32
    return %arg0, %c0_i32 : i32, i32
  }
}

</mosaic_0001>

<bundles_post_ra>
// kernel: tpu_custom_call.1
= control target key start
LH: loop header
LB: loop body
LE: loop exit
PB: predicated region body
PF: predicated region fallthrough
CT: control target
= control target key end

     0   :  { %12 = vsyncpa [#allocation5], 0  ;;  %s1502_s0 = inlined_call_operand.hbm [shape: bf16[8,2,128], index: 0, kind: input, shape index: {}]   ;;  %s1503_s1 = inlined_call_operand.hbm [shape: bf16[32,128], index: 1, kind: input, shape index: {}]   ;;  %s1504_s2 = inlined_call_operand.vmem [shape: f32[2,32], index: 2, kind: input, shape index: {}]   ;;  %s1505_s3 = inlined_call_operand.vmem [shape: f32[2,32], index: 3, kind: input, shape index: {}]   ;;  %s1506_s4 = inlined_call_operand.hbm [shape: bf16[8,2,32], index: 4, kind: output, shape index: {0}]   ;;  %s1507_s5 = inlined_call_operand.hbm [shape: f32[2,32], index: 5, kind: output, shape index: {1}]   ;;  %s1508_s6 = inlined_call_operand.hbm [shape: f32[2,32], index: 6, kind: output, shape index: {2}]  }
   0x1   :  { %13 = vsyncpa [#allocation8], 0 }
   0x2   :  { %14 = vsyncpa [#allocation6], 0 }
   0x3   :  { %15 = vsyncpa [#allocation11], 0  ;;  %s1221_s21 = smov [#allocation4]   ;;  %s1103_s25 = scalar_lea.hbm %s1502_s0, 128 }
   0x4   :  { %s21_s22 = sshll.u32 %s1221_s21, 4  ;;  %p1104_p0 = scmp.ne.s32.totalorder %s1502_s0, %s1103_s25  ;;  %s22_s22 = int_to_ptr.vmem [resolvable:$true] %s21_s22 }
   0x5   :  { %p1107_p1 = scmp.lt.u32.totalorder %s1103_s25, %s1502_s0 }
   0x7   :  { %p1109_p2 = pnand %p1107_p1, %p1104_p0 }
   0x9   :  { %1112 = shalt.err (!%p1109_p2)
}
   0xa   :  { %s1113_s30 = scalar_lea.vmem %s22_s22, 128  ;;  %p1118_p4 = scmp.lt.s32.totalorder %s22_s22, %s22_s22 }
   0xb   :  { %p1114_p3 = scmp.ne.s32.totalorder %s22_s22, %s1113_s30  ;;  %p1119_p5 = scmp.lt.s32.totalorder %s1113_s30, %s1113_s30 }
   0xd   :  { %p1120_p6 = por %p1119_p5, %p1118_p4 }
   0xf   :  { %p1121_p7 = pnand %p1120_p6, %p1114_p3 }
  0x11   :  { %1124 = shalt.err (!%p1121_p7)
}
  0x12   :  { %s1222_s7 = smov 16   ;;  %s1223_s8 = smov 1  }
  0x13   :  { %27 = dma.hbm_to_vmem [thread:$0]  %s1502_s0, 128, %s22_s22, [#allocation5], %s1222_s7, %s1222_s7, %s1223_s8  }
  0x14   :  { %s1224_s11 = smov [#allocation7]   ;;  %s1125_s15 = scalar_lea.hbm %s1503_s1, 256 }
  0x15   :  { %s33_s12 = sshll.u32 %s1224_s11, 4  ;;  %p1126_p8 = scmp.ne.s32.totalorder %s1503_s1, %s1125_s15  ;;  %s34_s12 = int_to_ptr.vmem [resolvable:$true] %s33_s12 }
  0x16   :  { %p1129_p9 = scmp.lt.u32.totalorder %s1125_s15, %s1503_s1 }
  0x18   :  { %p1131_p10 = pnand %p1129_p9, %p1126_p8 }
  0x1a   :  { %1134 = shalt.err (!%p1131_p10)
}
  0x1b   :  { %s1135_s20 = scalar_lea.vmem %s34_s12, 256  ;;  %p1140_p12 = scmp.lt.s32.totalorder %s34_s12, %s34_s12 }
  0x1c   :  { %p1136_p11 = scmp.ne.s32.totalorder %s34_s12, %s1135_s20  ;;  %p1141_p13 = scmp.lt.s32.totalorder %s1135_s20, %s1135_s20 }
  0x1e   :  { %p1142_p0 = por %p1141_p13, %p1140_p12 }
  0x20   :  { %p1143_p1 = pnand %p1142_p0, %p1136_p11 }
  0x22   :  { %1146 = shalt.err (!%p1143_p1)
}
  0x23   :  { %s1225_s0 = smov 64   ;;  %s1226_s21 = smov 4  }
  0x24   :  { %39 = dma.hbm_to_vmem [thread:$0]  %s1503_s1, 256, %s34_s12, [#allocation8], %s1225_s0, %s1225_s0, %s1226_s21  }
  0x25   :  { %1213 = dma.done.wait [#allocation5], 128  }
  0x26   :  { %1214 = vsyncadd [#allocation5], 4294967168 }
  0x27   :  { %1215 = dma.done.wait [#allocation8], 256  }
  0x28   :  { %1216 = vsyncadd [#allocation8], 4294967040  ;;  %v1227_v0 = vmov 0.0   ;;  %vm1228_vm0 = vmmov 0   ;;  %v1306_v1 = vld [vmem:[#allocation7] sm:$0xff]   ;;  %vm56_vm1 = vcmask 254976  }
  0x29   :  { %958 = vmatprep.subr.bf16.mxu0 %v1227_v0  ;;  %962 = vmatprep.mubr.msk.bf16.mxu0 %vm1228_vm0, %v1227_v0  ;;  %v1309_v2 = vld [vmem:[#allocation7 + $0x8] sm:$0xff]   ;;  %v55_v3 = vld [vmem:[%s1504_s2] sm:$0x3]  ;;  %vm81_vm2 = vcmask 261120   ;;  %v66_v7 = vld [vmem:[#allocation4] sm:$0x1] }
  0x2a   :  { %966 = vmatprep.subr.bf16.mxu1 %v1227_v0  ;;  %970 = vmatprep.mubr.msk.bf16.mxu1 %vm1228_vm0, %v1227_v0  ;;  %57 = vst.msk [vmem:[#allocation2] sm:$0x3] %vm56_vm1, %v55_v3  ;;  %v58_v6 = vld [vmem:[%s1505_s3] sm:$0x3]  ;;  %v67_v8 = vunpack.c.l.bf16 %v66_v7  ;;  %s1229_s26 = smov 32   ;;  %vm180_vm3 = vcmask 253952  }
  0x2b   :  { %959 = vmatpush3.bf16.msra.mxu0 %v1306_v1  ;;  %967 = vmatpush3.bf16.msra.mxu1 %v1306_v1  ;;  %59 = vst.msk [vmem:[#allocation3] sm:$0x3] %vm56_vm1, %v58_v6  ;;  %v183_v31 = vld [vmem:[#allocation4 + $0x1] sm:$0x1]  ;;  %v277_v53 = vld [vmem:[#allocation4 + $0x2] sm:$0x1] }
  0x2c   :  { %960 = vmatprep.subr.bf16.mxu0 %v1227_v0  ;;  %968 = vmatprep.subr.bf16.mxu1 %v1227_v0  ;;  %v184_v32 = vunpack.c.l.bf16 %v183_v31  ;;  %v278_v54 = vunpack.c.l.bf16 %v277_v53  ;;  %s1232_s3 = smov 96   ;;  %s1233_s27 = smov [#allocation10]  }
  0x2d   :  { %s888_s28 = sshll.u32 %s1233_s27, 4  ;;  %s1234_s29 = smov [#allocation12]   ;;  %s889_s28 = int_to_ptr.vmem [resolvable:$true] %s888_s28 }
  0x2e   :  { %s898_s30 = sshll.u32 %s1234_s29, 4  ;;  %s1235_s9 = smov [#allocation9]   ;;  %s1446_s30 = int_to_ptr.vmem [resolvable:$true] %s898_s30 }
  0x2f   :  { %961 = vmatpush3.bf16.msra.mxu0 %v1309_v2  ;;  %969 = vmatpush3.bf16.msra.mxu1 %v1309_v2  ;;  %s875_s10 = sshll.u32 %s1235_s9, 4  ;;  %s1147_s11 = scalar_lea.vmem %s889_s28, 32  ;;  %s1450_s10 = int_to_ptr.vmem [resolvable:$true] %s875_s10 }
  0x30   :  { %974 = vmatprep.subr.bf16.mxu0 %v1227_v0  ;;  %982 = vmatprep.subr.bf16.mxu1 %v1227_v0  ;;  %p1148_p2 = scmp.ne.s32.totalorder %s889_s28, %s1147_s11  ;;  %p1152_p3 = scmp.lt.s32.totalorder %s889_s28, %s889_s28 }
  0x31   :  { %v64_v4 = vld [vmem:[#allocation2] sm:$0x3]  ;;  %p1153_p4 = scmp.lt.s32.totalorder %s1147_s11, %s1147_s11 }
  0x32   :  { %v68_v5 = vpack.c.bf16 %v64_v4, %v64_v4  ;;  %v919_v15 = vld.sshfl [vmem:[#allocation3] sm:$0x3 pattern:$0x76325410] }
  0x33   :  { %p1154_p5 = por %p1153_p4, %p1152_p3 }
  0x34   :  { %963 = vmatmul.mubr.msk.bf16.vlgmr.msra.gmra.mrb[0].mxu0 %vm81_vm2, %v68_v5 }
  0x35   :  { %975 = vmatpush3.bf16.msra.mxu0 %v1306_v1  ;;  %978 = vmatprep.mubr.msk.bf16.mxu0 %vm1228_vm0, %v1227_v0  ;;  %p1155_p6 = pnand %p1154_p5, %p1148_p2 }
  0x36   :  { %976 = vmatprep.subr.bf16.mxu0 %v1227_v0 }
  0x39   :  { %977 = vmatpush3.bf16.msra.mxu0 %v1309_v2 }
  0x3a   :  { %990 = vmatprep.subr.bf16.mxu0 %v1227_v0 }
 0x107   :  { %v119_v9 = vpop.f32.mrb[0].mxu0 }
 0x108   :  { %v125_v10 = vadd.f32 %v119_v9, %v67_v8  ;;  %v964_v11 = vpop.f32.mrb[1].mxu0 }
 0x109   :  { %v122_v12 = vpop.f32.mrb[2].mxu0 }
 0x10a   :  { %v965_v13 = vpop.f32.mrb[3].mxu0  ;;  %1039 = vtanh.f32 %v125_v10  ;;  %v918_v16 = vmul.f32 -1.442695, %v125_v10 }
 0x10c   :  { %1041 = vpow2.f32 %v918_v16 }
 0x114   :  { %v1040_v14 = vpop.eup %1039 }
 0x115   :  { %146 = vrot.lane.b32.xlu0 %v1040_v14, %s1225_s0  ;;  %v371_v14 = vld [vmem:[#allocation4 + $0x3] sm:$0x1] }
 0x116   :  { %v1042_v17 = vpop.eup %1041 }
 0x117   :  { %v129_v18 = vadd.f32 1.0, %v1042_v17 }
 0x119   :  { %141 = vrot.lane.b32.xlu0 %v919_v15, %s1229_s26  ;;  %1043 = vrcp.f32 %v129_v18  ;;  %v372_v15 = vunpack.c.l.bf16 %v371_v14 }
 0x123   :  { %v1044_v19 = vpop.eup %1043 }
 0x187   :  { %v147_v20 = vpop.permute.xlu0 %146 }
 0x188   :  { %v149_v21 = vmul.f32 %v1044_v19, %v147_v20 }
 0x18a   :  { %151 = vrot.lane.b32.xlu1 %v149_v21, %s1229_s26 }
 0x18b   :  { %v142_v22 = vpop.permute.xlu0 %141 }
 0x18c   :  { %v144_v23 = vmul.f32 %v1044_v19, %v142_v22 }
 0x1fc   :  { %v152_v24 = vpop.permute.xlu1 %151 }
 0x1fd   :  { %v154_v25 = vadd.f32 %v152_v24, %v144_v23 }
 0x1ff   :  { %1045 = vtanh.f32 %v154_v25 }
 0x209   :  { %v1046_v26 = vpop.eup %1045 }
 0x20a   :  { %157 = vrot.lane.b32.xlu1 %v1046_v26, %s1225_s0 }
 0x27c   :  { %v158_v27 = vpop.permute.xlu1 %157 }
 0x27d   :  { %v160_v28 = vmul.f32 %v1044_v19, %v158_v27 }
 0x27f   :  { %v1337_v29 = vpack.c.bf16 %v160_v28, %v160_v28 }
 0x281   :  { %185 = vrot.lane.b32.xlu0 %v1337_v29, %s1229_s26 }
 0x2f3   :  { %v186_v30 = vpop.permute.xlu0 %185 }
 0x2f4   :  { %971 = vmatmul.mubr.msk.bf16.vlgmr.msra.gmra.mrb[0].mxu1 %vm81_vm2, %v186_v30 }
 0x2f5   :  { %983 = vmatpush3.bf16.msra.mxu1 %v1306_v1  ;;  %986 = vmatprep.mubr.msk.bf16.mxu1 %vm1228_vm0, %v1227_v0 }
 0x2f6   :  { %984 = vmatprep.subr.bf16.mxu1 %v1227_v0 }
 0x2f9   :  { %985 = vmatpush3.bf16.msra.mxu1 %v1309_v2 }
 0x2fa   :  { %998 = vmatprep.subr.bf16.mxu1 %v1227_v0 }
 0x3c7   :  { %v224_v33 = vpop.f32.mrb[0].mxu1 }
 0x3c8   :  { %v230_v34 = vadd.f32 %v224_v33, %v184_v32  ;;  %v972_v35 = vpop.f32.mrb[1].mxu1 }
 0x3c9   :  { %v227_v36 = vpop.f32.mrb[2].mxu1 }
 0x3ca   :  { %1047 = vtanh.f32 %v230_v34  ;;  %v973_v37 = vpop.f32.mrb[3].mxu1  ;;  %v921_v39 = vmul.f32 -1.442695, %v230_v34 }
 0x3cb   :  { %v465_v37 = vld [vmem:[#allocation4 + $0x4] sm:$0x1] }
 0x3cc   :  { %1049 = vpow2.f32 %v921_v39 }
 0x3d4   :  { %v1048_v38 = vpop.eup %1047 }
 0x3d5   :  { %240 = vrot.lane.b32.xlu1 %v1048_v38, %s1225_s0  ;;  %v466_v38 = vunpack.c.l.bf16 %v465_v37 }
 0x3d6   :  { %v1050_v40 = vpop.eup %1049 }
 0x3d7   :  { %v234_v41 = vadd.f32 1.0, %v1050_v40 }
 0x3d9   :  { %1051 = vrcp.f32 %v234_v41 }
 0x3e3   :  { %v1052_v42 = vpop.eup %1051 }
 0x3e4   :  { %v238_v45 = vmul.f32 %v1052_v42, %v154_v25 }
 0x447   :  { %v241_v43 = vpop.permute.xlu1 %240 }
 0x448   :  { %v243_v44 = vmul.f32 %v1052_v42, %v241_v43 }
 0x44a   :  { %245 = vrot.lane.b32.xlu0 %v243_v44, %s1229_s26 }
 0x4bc   :  { %v246_v46 = vpop.permute.xlu0 %245 }
 0x4bd   :  { %v248_v47 = vadd.f32 %v246_v46, %v238_v45 }
 0x4bf   :  { %1053 = vtanh.f32 %v248_v47 }
 0x4c9   :  { %v1054_v48 = vpop.eup %1053 }
 0x4ca   :  { %251 = vrot.lane.b32.xlu1 %v1054_v48, %s1225_s0 }
 0x53c   :  { %v252_v49 = vpop.permute.xlu1 %251 }
 0x53d   :  { %v254_v50 = vmul.f32 %v1052_v42, %v252_v49 }
 0x53f   :  { %v1351_v51 = vpack.c.bf16 %v254_v50, %v254_v50 }
 0x541   :  { %279 = vrot.lane.b32.xlu0 %v1351_v51, %s1229_s26 }
 0x5b3   :  { %v280_v52 = vpop.permute.xlu0 %279 }
 0x5b4   :  { %979 = vmatmul.mubr.msk.bf16.vlgmr.msra.gmra.mrb[4].mxu0 %vm81_vm2, %v280_v52 }
 0x5b5   :  { %991 = vmatpush3.bf16.msra.mxu0 %v1306_v1  ;;  %994 = vmatprep.mubr.msk.bf16.mxu0 %vm1228_vm0, %v1227_v0 }
 0x5b6   :  { %992 = vmatprep.subr.bf16.mxu0 %v1227_v0 }
 0x5b9   :  { %993 = vmatpush3.bf16.msra.mxu0 %v1309_v2 }
 0x5ba   :  { %1006 = vmatprep.subr.bf16.mxu0 %v1227_v0 }
 0x687   :  { %v318_v55 = vpop.f32.mrb[4].mxu0 }
 0x688   :  { %v324_v56 = vadd.f32 %v318_v55, %v278_v54  ;;  %v980_v57 = vpop.f32.mrb[5].mxu0 }
 0x689   :  { %v321_v58 = vpop.f32.mrb[6].mxu0 }
 0x68a   :  { %1055 = vtanh.f32 %v324_v56  ;;  %v981_v59 = vpop.f32.mrb[7].mxu0  ;;  %v923_v61 = vmul.f32 -1.442695, %v324_v56 }
 0x68c   :  { %1057 = vpow2.f32 %v923_v61 }
 0x694   :  { %v1056_v60 = vpop.eup %1055 }
 0x695   :  { %334 = vrot.lane.b32.xlu1 %v1056_v60, %s1225_s0  ;;  %v559_v60 = vld [vmem:[#allocation4 + $0x5] sm:$0x1] }
 0x696   :  { %v1058_v62 = vpop.eup %1057  ;;  %v560_v61 = vunpack.c.l.bf16 %v559_v60 }
 0x697   :  { %v328_v63 = vadd.f32 1.0, %v1058_v62 }
 0x699   :  { %1059 = vrcp.f32 %v328_v63 }
 0x6a3   :  { %v1060_v3 = vpop.eup %1059 }
 0x6a4   :  { %v332_v6 = vmul.f32 %v1060_v3, %v248_v47 }
 0x707   :  { %v335_v4 = vpop.permute.xlu1 %334 }
 0x708   :  { %v337_v5 = vmul.f32 %v1060_v3, %v335_v4 }
 0x70a   :  { %339 = vrot.lane.b32.xlu0 %v337_v5, %s1229_s26 }
 0x77c   :  { %v340_v7 = vpop.permute.xlu0 %339 }
 0x77d   :  { %v342_v8 = vadd.f32 %v340_v7, %v332_v6 }
 0x77f   :  { %1061 = vtanh.f32 %v342_v8 }
 0x789   :  { %v1062_v9 = vpop.eup %1061 }
 0x78a   :  { %345 = vrot.lane.b32.xlu1 %v1062_v9, %s1225_s0 }
 0x7fc   :  { %v346_v10 = vpop.permute.xlu1 %345 }
 0x7fd   :  { %v348_v11 = vmul.f32 %v1060_v3, %v346_v10 }
 0x7ff   :  { %v1365_v12 = vpack.c.bf16 %v348_v11, %v348_v11 }
 0x801   :  { %373 = vrot.lane.b32.xlu0 %v1365_v12, %s1229_s26 }
 0x873   :  { %v374_v13 = vpop.permute.xlu0 %373 }
 0x874   :  { %987 = vmatmul.mubr.msk.bf16.vlgmr.msra.gmra.mrb[4].mxu1 %vm81_vm2, %v374_v13 }
 0x875   :  { %999 = vmatpush3.bf16.msra.mxu1 %v1306_v1  ;;  %1002 = vmatprep.mubr.msk.bf16.mxu1 %vm1228_vm0, %v1227_v0 }
 0x876   :  { %1000 = vmatprep.subr.bf16.mxu1 %v1227_v0 }
 0x879   :  { %1001 = vmatpush3.bf16.msra.mxu1 %v1309_v2 }
 0x87a   :  { %1014 = vmatprep.subr.bf16.mxu1 %v1227_v0 }
 0x947   :  { %v412_v16 = vpop.f32.mrb[4].mxu1 }
 0x948   :  { %v418_v17 = vadd.f32 %v412_v16, %v372_v15  ;;  %v988_v18 = vpop.f32.mrb[5].mxu1 }
 0x949   :  { %v415_v19 = vpop.f32.mrb[6].mxu1 }
 0x94a   :  { %1063 = vtanh.f32 %v418_v17  ;;  %v989_v20 = vpop.f32.mrb[7].mxu1  ;;  %v925_v22 = vmul.f32 -1.442695, %v418_v17  ;;  %v653_v19 = vld [vmem:[#allocation4 + $0x6] sm:$0x1] }
 0x94b   :  { %v654_v20 = vunpack.c.l.bf16 %v653_v19 }
 0x94c   :  { %1065 = vpow2.f32 %v925_v22 }
 0x954   :  { %v1064_v21 = vpop.eup %1063 }
 0x955   :  { %428 = vrot.lane.b32.xlu1 %v1064_v21, %s1225_s0 }
 0x956   :  { %v1066_v23 = vpop.eup %1065 }
 0x957   :  { %v422_v24 = vadd.f32 1.0, %v1066_v23 }
 0x959   :  { %1067 = vrcp.f32 %v422_v24 }
 0x963   :  { %v1068_v25 = vpop.eup %1067 }
 0x964   :  { %v426_v28 = vmul.f32 %v1068_v25, %v342_v8 }
 0x9c7   :  { %v429_v26 = vpop.permute.xlu1 %428 }
 0x9c8   :  { %v431_v27 = vmul.f32 %v1068_v25, %v429_v26 }
 0x9ca   :  { %433 = vrot.lane.b32.xlu0 %v431_v27, %s1229_s26 }
 0xa3c   :  { %v434_v30 = vpop.permute.xlu0 %433 }
 0xa3d   :  { %v436_v31 = vadd.f32 %v434_v30, %v426_v28 }
 0xa3f   :  { %1069 = vtanh.f32 %v436_v31 }
 0xa49   :  { %v1070_v32 = vpop.eup %1069 }
 0xa4a   :  { %439 = vrot.lane.b32.xlu1 %v1070_v32, %s1225_s0 }
 0xabc   :  { %v440_v33 = vpop.permute.xlu1 %439 }
 0xabd   :  { %v442_v34 = vmul.f32 %v1068_v25, %v440_v33 }
 0xabf   :  { %v1379_v35 = vpack.c.bf16 %v442_v34, %v442_v34 }
 0xac1   :  { %467 = vrot.lane.b32.xlu0 %v1379_v35, %s1229_s26 }
 0xb33   :  { %v468_v36 = vpop.permute.xlu0 %467 }
 0xb34   :  { %995 = vmatmul.mubr.msk.bf16.vlgmr.msra.gmra.mrb[8].mxu0 %vm81_vm2, %v468_v36 }
 0xb35   :  { %1007 = vmatpush3.bf16.msra.mxu0 %v1306_v1  ;;  %1010 = vmatprep.mubr.msk.bf16.mxu0 %vm1228_vm0, %v1227_v0 }
 0xb36   :  { %1008 = vmatprep.subr.bf16.mxu0 %v1227_v0 }
 0xb39   :  { %1009 = vmatpush3.bf16.msra.mxu0 %v1309_v2 }
 0xc07   :  { %v506_v39 = vpop.f32.mrb[8].mxu0 }
 0xc08   :  { %v512_v40 = vadd.f32 %v506_v39, %v466_v38  ;;  %v996_v41 = vpop.f32.mrb[9].mxu0 }
 0xc09   :  { %v509_v42 = vpop.f32.mrb[10].mxu0 }
 0xc0a   :  { %1071 = vtanh.f32 %v512_v40  ;;  %v997_v43 = vpop.f32.mrb[11].mxu0  ;;  %v927_v45 = vmul.f32 -1.442695, %v512_v40 }
 0xc0b   :  { %v747_v43 = vld [vmem:[#allocation4 + $0x7] sm:$0x1] }
 0xc0c   :  { %1073 = vpow2.f32 %v927_v45 }
 0xc14   :  { %v1072_v44 = vpop.eup %1071 }
 0xc15   :  { %522 = vrot.lane.b32.xlu1 %v1072_v44, %s1225_s0  ;;  %v748_v44 = vunpack.c.l.bf16 %v747_v43 }
 0xc16   :  { %v1074_v46 = vpop.eup %1073 }
 0xc17   :  { %v516_v47 = vadd.f32 1.0, %v1074_v46 }
 0xc19   :  { %1075 = vrcp.f32 %v516_v47 }
 0xc23   :  { %v1076_v48 = vpop.eup %1075 }
 0xc24   :  { %v520_v52 = vmul.f32 %v1076_v48, %v436_v31 }
 0xc87   :  { %v523_v49 = vpop.permute.xlu1 %522 }
 0xc88   :  { %v525_v50 = vmul.f32 %v1076_v48, %v523_v49 }
 0xc8a   :  { %527 = vrot.lane.b32.xlu0 %v525_v50, %s1229_s26 }
 0xcfc   :  { %v528_v53 = vpop.permute.xlu0 %527 }
 0xcfd   :  { %v530_v54 = vadd.f32 %v528_v53, %v520_v52 }
 0xcff   :  { %1077 = vtanh.f32 %v530_v54 }
 0xd09   :  { %v1078_v55 = vpop.eup %1077 }
 0xd0a   :  { %533 = vrot.lane.b32.xlu1 %v1078_v55, %s1225_s0  ;;  %v1230_v55 = vmov 1966171168  }
 0xd7c   :  { %v534_v56 = vpop.permute.xlu1 %533 }
 0xd7d   :  { %v536_v57 = vmul.f32 %v1076_v48, %v534_v56  ;;  %v164_v56 = vunpack.c.l.s4 %v1230_v55 }
 0xd7f   :  { %v1392_v58 = vpack.c.bf16 %v536_v57, %v536_v57  ;;  %v166_v57 = vlaneseq }
 0xd81   :  { %561 = vrot.lane.b32.xlu0 %v1392_v58, %s1229_s26  ;;  %v167_v60 = vshrl.u32 %v166_v57, 7 }
 0xdf3   :  { %v562_v59 = vpop.permute.xlu0 %561 }
 0xdf4   :  { %1003 = vmatmul.mubr.msk.bf16.vlgmr.msra.gmra.mrb[8].mxu1 %vm81_vm2, %v562_v59  ;;  %v165_v59 = vunpack.c.0.s8 %v164_v56 }
 0xdf5   :  { %1015 = vmatpush3.bf16.msra.mxu1 %v1306_v1  ;;  %1018 = vmatprep.mubr.msk.bf16.mxu1 %vm1228_vm0, %v1227_v0 }
 0xdf6   :  { %1016 = vmatprep.subr.bf16.mxu1 %v1227_v0 }
 0xdf9   :  { %1017 = vmatpush3.bf16.msra.mxu1 %v1309_v2 }
 0xec7   :  { %v600_v62 = vpop.f32.mrb[8].mxu1 }
 0xec8   :  { %v606_v63 = vadd.f32 %v600_v62, %v560_v61  ;;  %v1004_v3 = vpop.f32.mrb[9].mxu1  ;;  %v168_v61 = vsub.s32 %v165_v59, %v167_v60 }
 0xec9   :  { %v603_v4 = vpop.f32.mrb[10].mxu1 }
 0xeca   :  { %1079 = vtanh.f32 %v606_v63  ;;  %v1005_v5 = vpop.f32.mrb[11].mxu1  ;;  %v929_v7 = vmul.f32 -1.442695, %v606_v63  ;;  %v263_v3 = vrot.slane %v1351_v51, %v168_v61 }
 0xecb   :  { %v451_v5 = vrot.slane %v1379_v35, %v168_v61 }
 0xecc   :  { %1081 = vpow2.f32 %v929_v7 }
 0xed4   :  { %v1080_v6 = vpop.eup %1079 }
 0xed5   :  { %616 = vrot.lane.b32.xlu1 %v1080_v6, %s1225_s0  ;;  %v270_v6 = vrot.slane %v263_v3, %v168_v61 }
 0xed6   :  { %v1082_v1 = vpop.eup %1081 }
 0xed7   :  { %v610_v8 = vadd.f32 1.0, %v1082_v1  ;;  %v458_v1 = vrot.slane %v451_v5, %v168_v61 }
 0xed9   :  { %1083 = vrcp.f32 %v610_v8 }
 0xee3   :  { %v1084_v9 = vpop.eup %1083 }
 0xee4   :  { %v614_v2 = vmul.f32 %v1084_v9, %v530_v54 }
 0xf47   :  { %v617_v0 = vpop.permute.xlu1 %616 }
 0xf48   :  { %v619_v10 = vmul.f32 %v1084_v9, %v617_v0 }
 0xf4a   :  { %621 = vrot.lane.b32.xlu0 %v619_v10, %s1229_s26 }
 0xfbc   :  { %v622_v11 = vpop.permute.xlu0 %621 }
 0xfbd   :  { %v624_v13 = vadd.f32 %v622_v11, %v614_v2  ;;  %v169_v2 = vrot.slane %v1337_v29, %v168_v61 }
 0xfbf   :  { %1085 = vtanh.f32 %v624_v13 }
 0xfc9   :  { %v1086_v14 = vpop.eup %1085 }
 0xfca   :  { %627 = vrot.lane.b32.xlu1 %v1086_v14, %s1225_s0  ;;  %v357_v14 = vrot.slane %v1365_v12, %v168_v61 }
 0xfcc   :  { %v364_v19 = vrot.slane %v357_v14, %v168_v61 }
0x103c   :  { %v628_v15 = vpop.permute.xlu1 %627 }
0x103d   :  { %v630_v16 = vmul.f32 %v1084_v9, %v628_v15  ;;  %v176_v15 = vrot.slane %v169_v2, %v168_v61 }
0x103f   :  { %v1405_v17 = vpack.c.bf16 %v630_v16, %v630_v16  ;;  %v545_v16 = vrot.slane %v1392_v58, %v168_v61 }
0x1041   :  { %655 = vrot.lane.b32.xlu0 %v1405_v17, %s1229_s26  ;;  %v639_v7 = vrot.slane %v1405_v17, %v168_v61  ;;  %v1231_v17 = vmov 1983009808  }
0x1043   :  { %v646_v8 = vrot.slane %v639_v7, %v168_v61 }
0x10b3   :  { %v656_v18 = vpop.permute.xlu0 %655 }
0x10b4   :  { %1011 = vmatmul.mubr.msk.bf16.vlgmr.msra.gmra.mrb[12].mxu0 %vm81_vm2, %v656_v18  ;;  %v842_v18 = vunpack.c.l.s4 %v1231_v17 }
0x1187   :  { %v694_v21 = vpop.f32.mrb[12].mxu0 }
0x1188   :  { %v700_v22 = vadd.f32 %v694_v21, %v654_v20  ;;  %v1012_v23 = vpop.f32.mrb[13].mxu0  ;;  %v843_v20 = vunpack.c.0.s8 %v842_v18  ;;  %v552_v21 = vrot.slane %v545_v16, %v168_v61 }
0x1189   :  { %v697_v24 = vpop.f32.mrb[14].mxu0 }
0x118a   :  { %1087 = vtanh.f32 %v700_v22  ;;  %v1013_v25 = vpop.f32.mrb[15].mxu0  ;;  %v931_v27 = vmul.f32 -1.442695, %v700_v22  ;;  %v846_v22 = vsub.s32 %v843_v20, %v167_v60 }
0x118c   :  { %1089 = vpow2.f32 %v931_v27 }
0x1194   :  { %v1088_v26 = vpop.eup %1087 }
0x1195   :  { %710 = vrot.lane.b32.xlu1 %v1088_v26, %s1225_s0 }
0x1196   :  { %v1090_v28 = vpop.eup %1089 }
0x1197   :  { %v704_v30 = vadd.f32 1.0, %v1090_v28 }
0x1199   :  { %1091 = vrcp.f32 %v704_v30 }
0x11a3   :  { %v1092_v31 = vpop.eup %1091 }
0x11a4   :  { %v708_v34 = vmul.f32 %v1092_v31, %v624_v13 }
0x1207   :  { %v711_v32 = vpop.permute.xlu1 %710 }
0x1208   :  { %v713_v33 = vmul.f32 %v1092_v31, %v711_v32 }
0x120a   :  { %715 = vrot.lane.b32.xlu0 %v713_v33, %s1229_s26 }
0x127c   :  { %v716_v36 = vpop.permute.xlu0 %715 }
0x127d   :  { %v718_v37 = vadd.f32 %v716_v36, %v708_v34 }
0x127f   :  { %1093 = vtanh.f32 %v718_v37 }
0x1289   :  { %v1094_v38 = vpop.eup %1093 }
0x128a   :  { %721 = vrot.lane.b32.xlu1 %v1094_v38, %s1225_s0 }
0x12fc   :  { %v722_v39 = vpop.permute.xlu1 %721 }
0x12fd   :  { %v724_v40 = vmul.f32 %v1092_v31, %v722_v39 }
0x12ff   :  { %v1413_v41 = vpack.c.bf16 %v724_v40, %v724_v40 }
0x1301   :  { %749 = vrot.lane.b32.xlu0 %v1413_v41, %s1229_s26  ;;  %v733_v29 = vrot.slane %v1413_v41, %v168_v61 }
0x1303   :  { %v740_v23 = vrot.slane %v733_v29, %v168_v61 }
0x1373   :  { %v750_v42 = vpop.permute.xlu0 %749 }
0x1374   :  { %1019 = vmatmul.mubr.msk.bf16.vlgmr.msra.gmra.mrb[12].mxu1 %vm81_vm2, %v750_v42 }
0x1447   :  { %v788_v45 = vpop.f32.mrb[12].mxu1 }
0x1448   :  { %v794_v46 = vadd.f32 %v788_v45, %v748_v44  ;;  %v1020_v47 = vpop.f32.mrb[13].mxu1 }
0x1449   :  { %v791_v48 = vpop.f32.mrb[14].mxu1 }
0x144a   :  { %1095 = vtanh.f32 %v794_v46  ;;  %v1021_v49 = vpop.f32.mrb[15].mxu1  ;;  %v933_v52 = vmul.f32 -1.442695, %v794_v46 }
0x144c   :  { %1097 = vpow2.f32 %v933_v52 }
0x1454   :  { %v1096_v50 = vpop.eup %1095 }
0x1455   :  { %804 = vrot.lane.b32.xlu1 %v1096_v50, %s1225_s0 }
0x1456   :  { %v1098_v53 = vpop.eup %1097 }
0x1457   :  { %v798_v54 = vadd.f32 1.0, %v1098_v53 }
0x1459   :  { %1099 = vrcp.f32 %v798_v54 }
0x1463   :  { %v1100_v62 = vpop.eup %1099 }
0x1464   :  { %v802_v9 = vmul.f32 %v1100_v62, %v718_v37 }
0x14c7   :  { %v805_v63 = vpop.permute.xlu1 %804 }
0x14c8   :  { %v807_v4 = vmul.f32 %v1100_v62, %v805_v63 }
0x14ca   :  { %809 = vrot.lane.b32.xlu0 %v807_v4, %s1229_s26 }
0x14ce   :  { %271 = vrot.lane.b32.xlu0 %v270_v6, %s1229_s26 }
0x14d2   :  { %459 = vrot.lane.b32.xlu0 %v458_v1, %s1229_s26 }
0x14d6   :  { %647 = vrot.lane.b32.xlu0 %v646_v8, %s1229_s26 }
0x153c   :  { %v810_v0 = vpop.permute.xlu0 %809 }
0x153d   :  { %v812_v10 = vadd.f32 %v810_v0, %v802_v9 }
0x153f   :  { %1101 = vtanh.f32 %v812_v10  ;;  %v860_v12 = vrot.slane %v812_v10, %v846_v22 }
0x1540   :  { %v272_v51 = vpop.permute.xlu0 %271 }
0x1541   :  { %275 = vst.msk [vmem:[#allocation9 + $0x1] sm:$0x1] %vm180_vm3, %v272_v51 }
0x1544   :  { %v460_v35 = vpop.permute.xlu0 %459 }
0x1545   :  { %463 = vst.msk [vmem:[#allocation9 + $0x3] sm:$0x1] %vm180_vm3, %v460_v35 }
0x1548   :  { %v648_v11 = vpop.permute.xlu0 %647 }
0x1549   :  { %v1102_v13 = vpop.eup %1101  ;;  %651 = vst.msk [vmem:[#allocation9 + $0x5] sm:$0x1] %vm180_vm3, %v648_v11 }
0x154a   :  { %815 = vrot.lane.b32.xlu1 %v1102_v13, %s1225_s0 }
0x154e   :  { %177 = vrot.lane.b32.xlu1 %v176_v15, %s1229_s26 }
0x1552   :  { %365 = vrot.lane.b32.xlu1 %v364_v19, %s1229_s26 }
0x1556   :  { %553 = vrot.lane.b32.xlu1 %v552_v21, %s1229_s26 }
0x155a   :  { %741 = vrot.lane.b32.xlu1 %v740_v23, %s1229_s26 }
0x155e   :  { %861 = vrot.lane.b32.xlu1 %v860_v12, %s1232_s3 }
0x15bc   :  { %v816_v24 = vpop.permute.xlu1 %815 }
0x15bd   :  { %v818_v58 = vmul.f32 %v1100_v62, %v816_v24 }
0x15bf   :  { %v819_v25 = vpack.c.bf16 %v818_v58, %v818_v58  ;;  %v847_v26 = vrot.slane %v818_v58, %v846_v22 }
0x15c0   :  { %v178_v27 = vpop.permute.xlu1 %177 }
0x15c1   :  { %v827_v28 = vrot.slane %v819_v25, %v168_v61  ;;  %181 = vst.msk [vmem:[#allocation9] sm:$0x1] %vm180_vm3, %v178_v27  ;;  %848 = vrot.lane.b32.xlu0 %v847_v26, %s1229_s26 }
0x15c3   :  { %v834_v30 = vrot.slane %v827_v28, %v168_v61 }
0x15c4   :  { %v366_v31 = vpop.permute.xlu1 %365 }
0x15c5   :  { %369 = vst.msk [vmem:[#allocation9 + $0x2] sm:$0x1] %vm180_vm3, %v366_v31  ;;  %835 = vrot.lane.b32.xlu0 %v834_v30, %s1229_s26 }
0x15c8   :  { %v554_v32 = vpop.permute.xlu1 %553 }
0x15c9   :  { %557 = vst.msk [vmem:[#allocation9 + $0x4] sm:$0x1] %vm180_vm3, %v554_v32 }
0x15cc   :  { %v742_v33 = vpop.permute.xlu1 %741 }
0x15cd   :  { %745 = vst.msk [vmem:[#allocation9 + $0x6] sm:$0x1] %vm180_vm3, %v742_v33 }
0x15d0   :  { %v862_v34 = vpop.permute.xlu1 %861 }
0x15d1   :  { %864 = vst.msk [vmem:[#allocation3] sm:$0x3] %vm56_vm1, %v862_v34  ;;  %869 = vst.msk [vmem:[#allocation12] sm:$0x3] %vm56_vm1, %v862_v34 }
0x1633   :  { %v849_v36 = vpop.permute.xlu0 %848 }
0x1634   :  { %852 = vst.msk [vmem:[#allocation2] sm:$0x3] %vm56_vm1, %v849_v36  ;;  %868 = vst.msk [vmem:[#allocation10] sm:$0x3] %vm56_vm1, %v849_v36 }
0x1635   :  { %1158 = shalt.err (!%p1155_p6)
}
0x1636   :  { %s1159_s14 = scalar_lea.hbm %s1507_s5, 32 }
0x1637   :  { %p1160_p7 = scmp.ne.s32.totalorder %s1507_s5, %s1159_s14  ;;  %p1163_p8 = scmp.lt.u32.totalorder %s1159_s14, %s1507_s5 }
0x1639   :  { %p1165_p9 = pnand %p1163_p8, %p1160_p7 }
0x163b   :  { %1168 = shalt.err (!%p1165_p9)
}
0x163c   :  { %891 = dma.vmem_to_hbm [thread:$0]  %s889_s28, 32, %s1507_s5, [#allocation11]  }
0x163d   :  { %s1169_s0 = scalar_lea.vmem %s1446_s30, 32  ;;  %p1174_p11 = scmp.lt.s32.totalorder %s1446_s30, %s1446_s30 }
0x163e   :  { %p1170_p10 = scmp.ne.s32.totalorder %s1446_s30, %s1169_s0  ;;  %p1175_p12 = scmp.lt.s32.totalorder %s1169_s0, %s1169_s0 }
0x1640   :  { %p1176_p13 = por %p1175_p12, %p1174_p11 }
0x1642   :  { %p1177_p0 = pnand %p1176_p13, %p1170_p10 }
0x1644   :  { %1180 = shalt.err (!%p1177_p0)
}
0x1645   :  { %s1181_s23 = scalar_lea.hbm %s1508_s6, 32 }
0x1646   :  { %p1182_p1 = scmp.ne.s32.totalorder %s1508_s6, %s1181_s23  ;;  %p1185_p2 = scmp.lt.u32.totalorder %s1181_s23, %s1508_s6 }
0x1648   :  { %p1187_p3 = pnand %p1185_p2, %p1182_p1 }
0x164a   :  { %1190 = shalt.err (!%p1187_p3)
}
0x164b   :  { %901 = dma.vmem_to_hbm [thread:$0]  %s1446_s30, 32, %s1508_s6, [#allocation11]   ;;  %v836_v37 = vpop.permute.xlu0 %835 }
0x164c   :  { %839 = vst.msk [vmem:[#allocation9 + $0x7] sm:$0x1] %vm180_vm3, %v836_v37  ;;  %s1191_s3 = scalar_lea.vmem %s1450_s10, 128  ;;  %p1196_p5 = scmp.lt.s32.totalorder %s1450_s10, %s1450_s10 }
0x164d   :  { %p1192_p4 = scmp.ne.s32.totalorder %s1450_s10, %s1191_s3  ;;  %p1197_p6 = scmp.lt.s32.totalorder %s1191_s3, %s1191_s3 }
0x164f   :  { %p1198_p7 = por %p1197_p6, %p1196_p5 }
0x1651   :  { %p1199_p8 = pnand %p1198_p7, %p1192_p4 }
0x1653   :  { %1202 = shalt.err (!%p1199_p8)
}
0x1654   :  { %s1203_s29 = scalar_lea.hbm %s1506_s4, 128 }
0x1655   :  { %p1204_p9 = scmp.ne.s32.totalorder %s1506_s4, %s1203_s29  ;;  %p1207_p10 = scmp.lt.u32.totalorder %s1203_s29, %s1506_s4 }
0x1657   :  { %p1209_p11 = pnand %p1207_p10, %p1204_p9 }
0x1659   :  { %1212 = shalt.err (!%p1209_p11)
}
0x165a   :  { %881 = dma.vmem_to_hbm [thread:$0]  %s1450_s10, 128, %s1506_s4, [#allocation6], %s1222_s7, %s1222_s7, %s1223_s8  }
0x165b   :  { %1217 = dma.done.wait [#allocation6], 128  }
0x165c   :  { %1218 = vsyncadd [#allocation6], 4294967168 }
0x165d   :  { %1219 = dma.done.wait [#allocation11], 64  }
0x165e   :  { %1220 = vsyncadd [#allocation11], 4294967232 }
0x165f   :  { %911 = vsyncpa [#allocation5], 1 }
0x1660   :  { %912 = vsyncpa [#allocation8], 1 }
0x1661   :  { %913 = vsyncpa [#allocation6], 1 }
0x1662   :  { %914 = vsyncpa [#allocation11], 1 }

</bundles_post_ra>
